<compile_context>
chip_gen: v6e
topology: v6e:2x2x1
jax: 0.10.0
libtpu: 0.0.40
codegen_flags: <defaults>
</compile_context>

<pallas_src>
import functools

import jax
import jax.numpy as jnp
from jax.experimental import pallas as pl
from jax.experimental.pallas import tpu as pltpu


# ----------------------------------------------------------------------------
# Fused Tree kernel (one grid step = TILE_N batch images, whole tree in VMEM)
# ----------------------------------------------------------------------------
def _tree_kernel(x_ref, wx_ref, whh_ref, wo1_ref, wo2_ref, bn_ref, o_ref,
                 *, H, WCo, has_shortcut, mxu_dtype):
    f32 = jnp.float32
    M = o_ref.shape[0]                      # TILE_N * H rows (batch folded in M)

    # Row masks for the vertical 'SAME' padding, shared by all four 3x3 convs.
    # Row m = n*H + h; rolls that wrap across image/batch boundaries land
    # exactly on the masked rows, so the batch fold stays exact.
    h_idx = jax.lax.broadcasted_iota(jnp.int32, (M, WCo), 0) % H
    not_top = h_idx != 0
    not_bot = h_idx != (H - 1)

    def affine(y, i):                       # folded (inference) BatchNorm
        return y * bn_ref[2 * i:2 * i + 1, :] + bn_ref[2 * i + 1:2 * i + 2, :]

    def vtaps(y):
        # y = [y_top | y_mid | y_bot]: per-vertical-tap partial sums, each
        # already containing the horizontal taps + horizontal padding.
        y_top = y[:, :WCo]
        y_mid = y[:, WCo:2 * WCo]
        y_bot = y[:, 2 * WCo:3 * WCo]
        dn = jnp.where(not_top, pltpu.roll(y_top, 1, 0), 0.0)      # y_top[h-1]
        up = jnp.where(not_bot, pltpu.roll(y_bot, M - 1, 0), 0.0)  # y_bot[h+1]
        return dn + y_mid + up

    x2 = x_ref[...]                                         # (M, W*Cin) f32
    xm = x2.astype(mxu_dtype)

    # ---- left BasicBlock (conv1 bands [+ 1x1 shortcut] share the x LHS) -----
    yx = jnp.dot(xm, wx_ref[...], preferred_element_type=f32)
    h1 = jnp.maximum(affine(vtaps(yx[:, :3 * WCo]), 0), 0.0)
    if has_shortcut:
        shortcut = affine(yx[:, 3 * WCo:4 * WCo], 1)
    else:
        shortcut = x2                      # identity shortcut (Cin==Cout, s=1)

    yl2 = jnp.dot(h1.astype(mxu_dtype), whh_ref[0], preferred_element_type=f32)
    out1 = jnp.maximum(affine(vtaps(yl2), 2) + shortcut, 0.0)

    # ---- right BasicBlock + Root half for out1 (share the out1 LHS) ---------
    yo1 = jnp.dot(out1.astype(mxu_dtype), wo1_ref[...], preferred_element_type=f32)
    h2 = jnp.maximum(affine(vtaps(yo1[:, :3 * WCo]), 3), 0.0)
    root1 = yo1[:, 3 * WCo:4 * WCo]        # out1 @ root_w[:Cout]

    yr2 = jnp.dot(h2.astype(mxu_dtype), whh_ref[1], preferred_element_type=f32)
    out2 = jnp.maximum(affine(vtaps(yr2), 4) + out1, 0.0)

    # ---- Root: relu(bn(cat([out1,out2]) @ root_w)) = root1 + out2 @ r2 ------
    root2 = jnp.dot(out2.astype(mxu_dtype), wo2_ref[...], preferred_element_type=f32)
    o_ref[...] = jnp.maximum(affine(root1 + root2, 5), 0.0).astype(o_ref.dtype)


# ----------------------------------------------------------------------------
# Host-side one-time weight re-layouts
# ----------------------------------------------------------------------------
def _band3x3_cat(w9, W):
    """(9, Cin, Cout) 3x3 weights -> (W*Cin, 3*W*Cout) band matrices, the three
    vertical taps concatenated along the output (N/lane) dimension.

    band_dy[s*Cin + c, x*Cout + o] = w[dy, s-x+1, c, o] when |s-x| <= 1 else 0,
    implementing horizontal taps and 'SAME' horizontal zero padding.
    """
    _, Cin, Cout = w9.shape
    w = w9.reshape(3, 3, Cin, Cout)
    src = jnp.arange(W)[:, None]                      # input column  s
    dst = jnp.arange(W)[None, :]                      # output column x
    diff = src - dst                                  # = dx - 1
    dx_idx = jnp.clip(diff + 1, 0, 2)
    mask = (jnp.abs(diff) <= 1)[:, :, None, None]
    mats = []
    for dy in range(3):
        taps = jnp.where(mask, w[dy][dx_idx], 0.0)    # (W, W, Cin, Cout)
        mats.append(jnp.transpose(taps, (0, 2, 1, 3)).reshape(W * Cin, W * Cout))
    return jnp.concatenate(mats, axis=1)              # (W*Cin, 3*W*Cout)


def _blockdiag1x1(w, W):
    """(Cin, Cout) 1x1 conv weight -> (W*Cin, W*Cout) block-diagonal matrix."""
    Cin, Cout = w.shape
    eye = jnp.eye(W, dtype=w.dtype)
    return (eye[:, None, :, None] * w[None, :, None, :]).reshape(W * Cin, W * Cout)


def _tile_bn(v, W):
    """Per-channel (C,) BN scale/shift -> (W*C,) lane-dense vector."""
    return jnp.tile(v, W)


def prepare_tree_params(params, H, W, mxu_dtype=jnp.float32):
    """One-time re-layout of Tree weights into kernel-ready packed arrays."""
    pleft, pright = params["left"], params["right"]
    Cin, Cout = pleft["w1"].shape[1], pleft["w1"].shape[2]
    WCo = W * Cout
    has_shortcut = "ws" in pleft

    # Dot group 1 (LHS = x): left conv1 bands [+ 1x1 projection shortcut].
    wx_parts = [_band3x3_cat(pleft["w1"], W)]
    if has_shortcut:
        wx_parts.append(_blockdiag1x1(pleft["ws"], W))
    else:
        assert Cin == Cout, "identity shortcut requires Cin == Cout"
    wx = jnp.concatenate(wx_parts, axis=1).astype(mxu_dtype)

    # Dot groups 2 & 4 (LHS = h1 / h2): second convs of left / right blocks.
    whh = jnp.stack([_band3x3_cat(pleft["w2"], W),
                     _band3x3_cat(pright["w2"], W)]).astype(mxu_dtype)

    # Dot group 3 (LHS = out1): right conv1 bands + Root half for out1.
    wo1 = jnp.concatenate([_band3x3_cat(pright["w1"], W),
                           _blockdiag1x1(params["root_w"][:Cout], W)],
                          axis=1).astype(mxu_dtype)
    # Dot group 5 (LHS = out2): Root half for out2.
    wo2 = _blockdiag1x1(params["root_w"][Cout:], W).astype(mxu_dtype)

    if has_shortcut:
        sls, bls = _tile_bn(pleft["ss"], W), _tile_bn(pleft["bs"], W)
    else:
        sls, bls = jnp.ones((WCo,), jnp.float32), jnp.zeros((WCo,), jnp.float32)
    bn = jnp.stack([
        _tile_bn(pleft["s1"], W), _tile_bn(pleft["b1"], W),
        sls, bls,
        _tile_bn(pleft["s2"], W), _tile_bn(pleft["b2"], W),
        _tile_bn(pright["s1"], W), _tile_bn(pright["b1"], W),
        _tile_bn(pright["s2"], W), _tile_bn(pright["b2"], W),
        _tile_bn(params["root_s"], W), _tile_bn(params["root_b"], W),
    ]).astype(jnp.float32)

    weights = dict(wx=wx, whh=whh, wo1=wo1, wo2=wo2, bn=bn)
    meta = dict(H=H, W=W, Cin=Cin, Cout=Cout,
                has_shortcut=has_shortcut, mxu_dtype=mxu_dtype)
    return weights, meta


def _pick_tile_n(N, H):
    """Target ~128-256 MXU rows per grid step; prefer >=2 steps when the batch
    is even so both v7x TensorCores get work (v5e saturates at ~128 rows)."""
    target = max(1, 256 // max(H, 1))
    tile = max(1, min(N, target))
    while N % tile:
        tile -= 1
    if N // tile == 1 and N % 2 == 0 and N >= 2:
        tile = N // 2
        while N % tile:
            tile -= 1
    return max(tile, 1)


# ----------------------------------------------------------------------------
# Wrapper: one fused pallas_call over the batch
# ----------------------------------------------------------------------------
def tree_forward(x, weights, *, H, W, Cin, Cout, has_shortcut, mxu_dtype,
                 tile_n=None):
    """Fused DLA Tree forward. x: (N, H, W, Cin) NHWC -> (N, H, W, Cout)."""
    N, Hx, Wx, Cx = x.shape
    assert (Hx, Wx, Cx) == (H, W, Cin), (x.shape, (H, W, Cin))
    WCi, WCo = W * Cin, W * Cout
    if tile_n is None:
        tile_n = _pick_tile_n(N, H)
    assert N % tile_n == 0, (N, tile_n)
    MB = tile_n * H                                   # MXU rows per grid step
    grid = (N // tile_n,)

    x2d = x.reshape(N * H, WCi).astype(jnp.float32)   # lane-dense rows

    kernel = functools.partial(_tree_kernel, H=H, WCo=WCo,
                               has_shortcut=has_shortcut, mxu_dtype=mxu_dtype)

    def _const_spec(a):
        nd = a.ndim
        # Weights use a constant index_map so they are DMA'd only once.
        # TODO(synk): pipeline_mode=pl.Buffered(1) would single-buffer these
        # once-fetched weights (halves their VMEM footprint); skipped here to
        # stay portable across jax versions -- negligible at these shapes.
        return pl.BlockSpec(a.shape, lambda n, _nd=nd: (0,) * _nd)

    in_specs = [pl.BlockSpec((MB, WCi), lambda n: (n, 0))]
    in_specs += [_const_spec(weights[k]) for k in ("wx", "whh", "wo1", "wo2", "bn")]

    out2d = pl.pallas_call(
        kernel,
        grid=grid,
        in_specs=in_specs,
        out_specs=pl.BlockSpec((MB, WCo), lambda n: (n, 0)),
        out_shape=jax.ShapeDtypeStruct((N * H, WCo), jnp.float32),
        compiler_params=pltpu.CompilerParams(dimension_semantics=("parallel",)),
    )(x2d, weights["wx"], weights["whh"], weights["wo1"], weights["wo2"],
      weights["bn"])
    return out2d.reshape(N, H, W, Cout)


# ----------------------------------------------------------------------------
# Deterministic parameter init (synthetic weights; BN folded to scale/shift)
# ----------------------------------------------------------------------------
def _fold_bn(gamma, beta, mean, var, eps=1e-5):
    scale = gamma / jnp.sqrt(var + eps)
    shift = beta - mean * scale
    return scale.astype(jnp.float32), shift.astype(jnp.float32)


def _init_bn(key, c):
    k1, k2, k3, k4 = jax.random.split(key, 4)
    gamma = 1.0 + 0.1 * jax.random.normal(k1, (c,), jnp.float32)
    beta = 0.1 * jax.random.normal(k2, (c,), jnp.float32)
    mean = 0.1 * jax.random.normal(k3, (c,), jnp.float32)
    var = jax.random.uniform(k4, (c,), jnp.float32, 0.5, 1.5)
    return _fold_bn(gamma, beta, mean, var)


def _init_block(key, cin, cout, stride=1):
    ks = jax.random.split(key, 6)
    p = {}
    p["w1"] = 0.2 * jax.random.normal(ks[0], (9, cin, cout), jnp.float32)
    p["s1"], p["b1"] = _init_bn(ks[1], cout)
    p["w2"] = 0.2 * jax.random.normal(ks[2], (9, cout, cout), jnp.float32)
    p["s2"], p["b2"] = _init_bn(ks[3], cout)
    if stride != 1 or cin != cout:
        p["ws"] = 0.2 * jax.random.normal(ks[4], (cin, cout), jnp.float32)
        p["ss"], p["bs"] = _init_bn(ks[5], cout)
    return p


def init_tree(key, cin, cout, stride=1):
    k1, k2, k3, k4 = jax.random.split(key, 4)
    return {
        "left": _init_block(k1, cin, cout, stride),
        "right": _init_block(k2, cout, cout, 1),
        "root_w": 0.2 * jax.random.normal(k3, (2 * cout, cout), jnp.float32),
        **dict(zip(("root_s", "root_b"), _init_bn(k4, cout))),
    }


# ----------------------------------------------------------------------------
# Pure-JAX reference (for correctness check)
# ----------------------------------------------------------------------------
def _ref_conv3x3(x, w9, scale, shift, relu=True, residual=None):
    w = w9.reshape(3, 3, x.shape[-1], w9.shape[-1])
    y = jax.lax.conv_general_dilated(
        x, w, (1, 1), "SAME", dimension_numbers=("NHWC", "HWIO", "NHWC"))
    y = y * scale + shift
    if residual is not None:
        y = y + residual
    if relu:
        y = jnp.maximum(y, 0.0)
    return y


def _ref_conv1x1(x, w, scale, shift, relu):
    y = jnp.einsum("nhwc,co->nhwo", x, w) * scale + shift
    if relu:
        y = jnp.maximum(y, 0.0)
    return y


def _ref_block(x, p):
    out = _ref_conv3x3(x, p["w1"], p["s1"], p["b1"], relu=True)
    sc = _ref_conv1x1(x, p["ws"], p["ss"], p["bs"], False) if "ws" in p else x
    return _ref_conv3x3(out, p["w2"], p["s2"], p["b2"], relu=True, residual=sc)


def tree_forward_ref(x, params):
    out1 = _ref_block(x, params["left"])
    out2 = _ref_block(out1, params["right"])
    cat = jnp.concatenate([out1, out2], axis=-1)
    return _ref_conv1x1(cat, params["root_w"], params["root_s"], params["root_b"], True)


# ----------------------------------------------------------------------------
if __name__ == "__main__":
    N, Cin, Cout, H, W = 2, 4, 8, 16, 16
    key = jax.random.PRNGKey(0)
    kx, kp = jax.random.split(key)

    # PyTorch-equivalent NCHW input, permuted to NHWC for the TPU kernel.
    x_nchw = jax.random.normal(kx, (N, Cin, H, W), jnp.float32)
    x = jnp.transpose(x_nchw, (0, 2, 3, 1))  # NHWC

    params = init_tree(kp, Cin, Cout, stride=1)
    ref = tree_forward_ref(x, params)

    # --- f32 path: exact-parity check ---------------------------------------
    w32, meta32 = prepare_tree_params(params, H, W, mxu_dtype=jnp.float32)
    fwd32 = jax.jit(functools.partial(tree_forward, **meta32))
    out32 = jax.block_until_ready(fwd32(x, w32))
    assert out32.shape == (N, H, W, Cout), out32.shape
    err32 = float(jnp.max(jnp.abs(out32 - ref)))
    assert err32 < 2e-3, f"f32 max abs err {err32}"

    # --- bf16 MXU-input path (f32 accumulate, f32 BN/ReLU epilogue) ----------
    w16, meta16 = prepare_tree_params(params, H, W, mxu_dtype=jnp.bfloat16)
    fwd16 = jax.jit(functools.partial(tree_forward, **meta16))
    out16 = jax.block_until_ready(fwd16(x, w16))
    err16 = float(jnp.max(jnp.abs(out16 - ref)))
    assert err16 < 2e-1, f"bf16 max abs err {err16}"

    print("KERNEL_OK")
</pallas_src>

<mosaic_0001>
module attributes {stable_mosaic.version = 11 : i64} {
  func.func @_tree_kernel(%arg0: i32, %arg1: memref<16x64xf32, #tpu.memory_space<vmem>>, %arg2: memref<64x512xf32, #tpu.memory_space<vmem>>, %arg3: memref<2x128x384xf32, #tpu.memory_space<vmem>>, %arg4: memref<128x512xf32, #tpu.memory_space<vmem>>, %arg5: memref<128x128xf32, #tpu.memory_space<vmem>>, %arg6: memref<12x128xf32, #tpu.memory_space<vmem>>, %arg7: memref<16x128xf32, #tpu.memory_space<vmem>>) attributes {dimension_semantics = [#tpu.dimension_semantics<parallel>], iteration_bounds = array<i64: 2>, scalar_prefetch = 0 : i64, scratch_operands = 0 : i64, tpu.core_type = #tpu.core_type<tc>, window_params = [{transform_indices = @transform_0, window_bounds = array<i64: 16, 64>}, {pipeline_mode = #tpu.pipeline_mode<synchronous>, transform_indices = @transform_1, window_bounds = array<i64: 64, 512>}, {pipeline_mode = #tpu.pipeline_mode<synchronous>, transform_indices = @transform_2, window_bounds = array<i64: 2, 128, 384>}, {pipeline_mode = #tpu.pipeline_mode<synchronous>, transform_indices = @transform_3, window_bounds = array<i64: 128, 512>}, {pipeline_mode = #tpu.pipeline_mode<synchronous>, transform_indices = @transform_4, window_bounds = array<i64: 128, 128>}, {pipeline_mode = #tpu.pipeline_mode<synchronous>, transform_indices = @transform_5, window_bounds = array<i64: 12, 128>}, {transform_indices = @transform_6, window_bounds = array<i64: 16, 128>}]} {
    %0 = tpu.iota {dimensions = array<i32: 0>} : vector<16x128xi32>
    %c16_i32 = arith.constant 16 : i32
    %c0_i32 = arith.constant 0 : i32
    %1 = arith.cmpi eq, %c16_i32, %c0_i32 : i32
    %c1_i32 = arith.constant 1 : i32
    %2 = arith.select %1, %c1_i32, %c16_i32 : i32
    %3 = vector.broadcast %2 : i32 to vector<16x128xi32>
    %4 = arith.remsi %0, %3 : vector<16x128xi32>
    %c0_i32_0 = arith.constant 0 : i32
    %5 = vector.broadcast %c0_i32_0 : i32 to vector<16x128xi32>
    %6 = arith.cmpi ne, %4, %5 : vector<16x128xi32>
    %c0_i32_1 = arith.constant 0 : i32
    %7 = vector.broadcast %c0_i32_1 : i32 to vector<16x128xi32>
    %8 = arith.cmpi slt, %4, %7 : vector<16x128xi32>
    %c0_i32_2 = arith.constant 0 : i32
    %9 = arith.cmpi slt, %2, %c0_i32_2 : i32
    %10 = vector.broadcast %9 : i1 to vector<16x128xi1>
    %11 = vector.broadcast %10 : vector<16x128xi1> to vector<16x128xi1>
    %12 = arith.xori %8, %11 : vector<16x128xi1>
    %13 = arith.andi %12, %6 : vector<16x128xi1>
    %14 = vector.broadcast %2 : i32 to vector<16x128xi32>
    %15 = arith.addi %4, %14 : vector<16x128xi32>
    %16 = arith.select %13, %15, %4 : vector<16x128xi1>, vector<16x128xi32>
    %c0_i32_3 = arith.constant 0 : i32
    %17 = vector.broadcast %c0_i32_3 : i32 to vector<16x128xi32>
    %18 = arith.cmpi ne, %16, %17 : vector<16x128xi32>
    %c15_i32 = arith.constant 15 : i32
    %19 = vector.broadcast %c15_i32 : i32 to vector<16x128xi32>
    %20 = arith.cmpi ne, %16, %19 : vector<16x128xi32>
    %c0 = arith.constant 0 : index
    %c0_4 = arith.constant 0 : index
    %21 = vector.load %arg1[%c0, %c0_4] : memref<16x64xf32, #tpu.memory_space<vmem>>, vector<16x64xf32>
    %c0_5 = arith.constant 0 : index
    %c0_6 = arith.constant 0 : index
    %22 = vector.load %arg2[%c0_5, %c0_6] : memref<64x512xf32, #tpu.memory_space<vmem>>, vector<64x512xf32>
    %cst = arith.constant dense<0.000000e+00> : vector<16x512xf32>
    %23 = tpu.matmul %21, %22, %cst {dimension_numbers = #tpu.dot_dimension_numbers<[1], [0], [0], [1], [0, 0, 1, 1], [], []>} : vector<16x64xf32>, vector<64x512xf32>, vector<16x512xf32> -> vector<16x512xf32>
    %24 = vector.extract_strided_slice %23 {offsets = [0, 0], sizes = [16, 384], strides = [1, 1]} : vector<16x512xf32> to vector<16x384xf32>
    %25 = vector.extract_strided_slice %24 {offsets = [0, 0], sizes = [16, 128], strides = [1, 1]} : vector<16x384xf32> to vector<16x128xf32>
    %26 = vector.extract_strided_slice %24 {offsets = [0, 128], sizes = [16, 128], strides = [1, 1]} : vector<16x384xf32> to vector<16x128xf32>
    %27 = vector.extract_strided_slice %24 {offsets = [0, 256], sizes = [16, 128], strides = [1, 1]} : vector<16x384xf32> to vector<16x128xf32>
    %c1_i32_7 = arith.constant 1 : i32
    %28 = tpu.dynamic_rotate %25 by %c1_i32_7 dim 0 : vector<16x128xf32>, i32 -> vector<16x128xf32>
    %cst_8 = arith.constant 0.000000e+00 : f32
    %29 = vector.broadcast %cst_8 : f32 to vector<16x128xf32>
    %30 = arith.select %18, %28, %29 : vector<16x128xi1>, vector<16x128xf32>
    %c15_i32_9 = arith.constant 15 : i32
    %31 = tpu.dynamic_rotate %27 by %c15_i32_9 dim 0 : vector<16x128xf32>, i32 -> vector<16x128xf32>
    %cst_10 = arith.constant 0.000000e+00 : f32
    %32 = vector.broadcast %cst_10 : f32 to vector<16x128xf32>
    %33 = arith.select %20, %31, %32 : vector<16x128xi1>, vector<16x128xf32>
    %34 = arith.addf %30, %26 : vector<16x128xf32>
    %35 = arith.addf %34, %33 : vector<16x128xf32>
    %c0_11 = arith.constant 0 : index
    %c0_12 = arith.constant 0 : index
    %36 = vector.load %arg6[%c0_11, %c0_12] : memref<12x128xf32, #tpu.memory_space<vmem>>, vector<1x128xf32>
    %37 = vector.broadcast %36 : vector<1x128xf32> to vector<16x128xf32>
    %38 = arith.mulf %35, %37 : vector<16x128xf32>
    %c1 = arith.constant 1 : index
    %c0_13 = arith.constant 0 : index
    %39 = vector.load %arg6[%c1, %c0_13] : memref<12x128xf32, #tpu.memory_space<vmem>>, vector<1x128xf32>
    %40 = vector.broadcast %39 : vector<1x128xf32> to vector<16x128xf32>
    %41 = arith.addf %38, %40 : vector<16x128xf32>
    %cst_14 = arith.constant 0.000000e+00 : f32
    %42 = vector.broadcast %cst_14 : f32 to vector<16x128xf32>
    %43 = arith.maximumf %41, %42 : vector<16x128xf32>
    %44 = vector.extract_strided_slice %23 {offsets = [0, 384], sizes = [16, 128], strides = [1, 1]} : vector<16x512xf32> to vector<16x128xf32>
    %c2 = arith.constant 2 : index
    %c0_15 = arith.constant 0 : index
    %45 = vector.load %arg6[%c2, %c0_15] : memref<12x128xf32, #tpu.memory_space<vmem>>, vector<1x128xf32>
    %46 = vector.broadcast %45 : vector<1x128xf32> to vector<16x128xf32>
    %47 = arith.mulf %44, %46 : vector<16x128xf32>
    %c3 = arith.constant 3 : index
    %c0_16 = arith.constant 0 : index
    %48 = vector.load %arg6[%c3, %c0_16] : memref<12x128xf32, #tpu.memory_space<vmem>>, vector<1x128xf32>
    %49 = vector.broadcast %48 : vector<1x128xf32> to vector<16x128xf32>
    %50 = arith.addf %47, %49 : vector<16x128xf32>
    %c0_17 = arith.constant 0 : index
    %c0_18 = arith.constant 0 : index
    %c0_19 = arith.constant 0 : index
    %51 = vector.load %arg3[%c0_17, %c0_18, %c0_19] : memref<2x128x384xf32, #tpu.memory_space<vmem>>, vector<1x128x384xf32>
    %52 = vector.shape_cast %51 : vector<1x128x384xf32> to vector<128x384xf32>
    %cst_20 = arith.constant dense<0.000000e+00> : vector<16x384xf32>
    %53 = tpu.matmul %43, %52, %cst_20 {dimension_numbers = #tpu.dot_dimension_numbers<[1], [0], [0], [1], [0, 0, 1, 1], [], []>} : vector<16x128xf32>, vector<128x384xf32>, vector<16x384xf32> -> vector<16x384xf32>
    %54 = vector.extract_strided_slice %53 {offsets = [0, 0], sizes = [16, 128], strides = [1, 1]} : vector<16x384xf32> to vector<16x128xf32>
    %55 = vector.extract_strided_slice %53 {offsets = [0, 128], sizes = [16, 128], strides = [1, 1]} : vector<16x384xf32> to vector<16x128xf32>
    %56 = vector.extract_strided_slice %53 {offsets = [0, 256], sizes = [16, 128], strides = [1, 1]} : vector<16x384xf32> to vector<16x128xf32>
    %c1_i32_21 = arith.constant 1 : i32
    %57 = tpu.dynamic_rotate %54 by %c1_i32_21 dim 0 : vector<16x128xf32>, i32 -> vector<16x128xf32>
    %cst_22 = arith.constant 0.000000e+00 : f32
    %58 = vector.broadcast %cst_22 : f32 to vector<16x128xf32>
    %59 = arith.select %18, %57, %58 : vector<16x128xi1>, vector<16x128xf32>
    %c15_i32_23 = arith.constant 15 : i32
    %60 = tpu.dynamic_rotate %56 by %c15_i32_23 dim 0 : vector<16x128xf32>, i32 -> vector<16x128xf32>
    %cst_24 = arith.constant 0.000000e+00 : f32
    %61 = vector.broadcast %cst_24 : f32 to vector<16x128xf32>
    %62 = arith.select %20, %60, %61 : vector<16x128xi1>, vector<16x128xf32>
    %63 = arith.addf %59, %55 : vector<16x128xf32>
    %64 = arith.addf %63, %62 : vector<16x128xf32>
    %c4 = arith.constant 4 : index
    %c0_25 = arith.constant 0 : index
    %65 = vector.load %arg6[%c4, %c0_25] : memref<12x128xf32, #tpu.memory_space<vmem>>, vector<1x128xf32>
    %66 = vector.broadcast %65 : vector<1x128xf32> to vector<16x128xf32>
    %67 = arith.mulf %64, %66 : vector<16x128xf32>
    %c5 = arith.constant 5 : index
    %c0_26 = arith.constant 0 : index
    %68 = vector.load %arg6[%c5, %c0_26] : memref<12x128xf32, #tpu.memory_space<vmem>>, vector<1x128xf32>
    %69 = vector.broadcast %68 : vector<1x128xf32> to vector<16x128xf32>
    %70 = arith.addf %67, %69 : vector<16x128xf32>
    %71 = arith.addf %70, %50 : vector<16x128xf32>
    %cst_27 = arith.constant 0.000000e+00 : f32
    %72 = vector.broadcast %cst_27 : f32 to vector<16x128xf32>
    %73 = arith.maximumf %71, %72 : vector<16x128xf32>
    %c0_28 = arith.constant 0 : index
    %c0_29 = arith.constant 0 : index
    %74 = vector.load %arg4[%c0_28, %c0_29] : memref<128x512xf32, #tpu.memory_space<vmem>>, vector<128x512xf32>
    %cst_30 = arith.constant dense<0.000000e+00> : vector<16x512xf32>
    %75 = tpu.matmul %73, %74, %cst_30 {dimension_numbers = #tpu.dot_dimension_numbers<[1], [0], [0], [1], [0, 0, 1, 1], [], []>} : vector<16x128xf32>, vector<128x512xf32>, vector<16x512xf32> -> vector<16x512xf32>
    %76 = vector.extract_strided_slice %75 {offsets = [0, 0], sizes = [16, 384], strides = [1, 1]} : vector<16x512xf32> to vector<16x384xf32>
    %77 = vector.extract_strided_slice %76 {offsets = [0, 0], sizes = [16, 128], strides = [1, 1]} : vector<16x384xf32> to vector<16x128xf32>
    %78 = vector.extract_strided_slice %76 {offsets = [0, 128], sizes = [16, 128], strides = [1, 1]} : vector<16x384xf32> to vector<16x128xf32>
    %79 = vector.extract_strided_slice %76 {offsets = [0, 256], sizes = [16, 128], strides = [1, 1]} : vector<16x384xf32> to vector<16x128xf32>
    %c1_i32_31 = arith.constant 1 : i32
    %80 = tpu.dynamic_rotate %77 by %c1_i32_31 dim 0 : vector<16x128xf32>, i32 -> vector<16x128xf32>
    %cst_32 = arith.constant 0.000000e+00 : f32
    %81 = vector.broadcast %cst_32 : f32 to vector<16x128xf32>
    %82 = arith.select %18, %80, %81 : vector<16x128xi1>, vector<16x128xf32>
    %c15_i32_33 = arith.constant 15 : i32
    %83 = tpu.dynamic_rotate %79 by %c15_i32_33 dim 0 : vector<16x128xf32>, i32 -> vector<16x128xf32>
    %cst_34 = arith.constant 0.000000e+00 : f32
    %84 = vector.broadcast %cst_34 : f32 to vector<16x128xf32>
    %85 = arith.select %20, %83, %84 : vector<16x128xi1>, vector<16x128xf32>
    %86 = arith.addf %82, %78 : vector<16x128xf32>
    %87 = arith.addf %86, %85 : vector<16x128xf32>
    %c6 = arith.constant 6 : index
    %c0_35 = arith.constant 0 : index
    %88 = vector.load %arg6[%c6, %c0_35] : memref<12x128xf32, #tpu.memory_space<vmem>>, vector<1x128xf32>
    %89 = vector.broadcast %88 : vector<1x128xf32> to vector<16x128xf32>
    %90 = arith.mulf %87, %89 : vector<16x128xf32>
    %c7 = arith.constant 7 : index
    %c0_36 = arith.constant 0 : index
    %91 = vector.load %arg6[%c7, %c0_36] : memref<12x128xf32, #tpu.memory_space<vmem>>, vector<1x128xf32>
    %92 = vector.broadcast %91 : vector<1x128xf32> to vector<16x128xf32>
    %93 = arith.addf %90, %92 : vector<16x128xf32>
    %cst_37 = arith.constant 0.000000e+00 : f32
    %94 = vector.broadcast %cst_37 : f32 to vector<16x128xf32>
    %95 = arith.maximumf %93, %94 : vector<16x128xf32>
    %96 = vector.extract_strided_slice %75 {offsets = [0, 384], sizes = [16, 128], strides = [1, 1]} : vector<16x512xf32> to vector<16x128xf32>
    %c1_38 = arith.constant 1 : index
    %c0_39 = arith.constant 0 : index
    %c0_40 = arith.constant 0 : index
    %97 = vector.load %arg3[%c1_38, %c0_39, %c0_40] : memref<2x128x384xf32, #tpu.memory_space<vmem>>, vector<1x128x384xf32>
    %98 = vector.shape_cast %97 : vector<1x128x384xf32> to vector<128x384xf32>
    %cst_41 = arith.constant dense<0.000000e+00> : vector<16x384xf32>
    %99 = tpu.matmul %95, %98, %cst_41 {dimension_numbers = #tpu.dot_dimension_numbers<[1], [0], [0], [1], [0, 0, 1, 1], [], []>} : vector<16x128xf32>, vector<128x384xf32>, vector<16x384xf32> -> vector<16x384xf32>
    %100 = vector.extract_strided_slice %99 {offsets = [0, 0], sizes = [16, 128], strides = [1, 1]} : vector<16x384xf32> to vector<16x128xf32>
    %101 = vector.extract_strided_slice %99 {offsets = [0, 128], sizes = [16, 128], strides = [1, 1]} : vector<16x384xf32> to vector<16x128xf32>
    %102 = vector.extract_strided_slice %99 {offsets = [0, 256], sizes = [16, 128], strides = [1, 1]} : vector<16x384xf32> to vector<16x128xf32>
    %c1_i32_42 = arith.constant 1 : i32
    %103 = tpu.dynamic_rotate %100 by %c1_i32_42 dim 0 : vector<16x128xf32>, i32 -> vector<16x128xf32>
    %cst_43 = arith.constant 0.000000e+00 : f32
    %104 = vector.broadcast %cst_43 : f32 to vector<16x128xf32>
    %105 = arith.select %18, %103, %104 : vector<16x128xi1>, vector<16x128xf32>
    %c15_i32_44 = arith.constant 15 : i32
    %106 = tpu.dynamic_rotate %102 by %c15_i32_44 dim 0 : vector<16x128xf32>, i32 -> vector<16x128xf32>
    %cst_45 = arith.constant 0.000000e+00 : f32
    %107 = vector.broadcast %cst_45 : f32 to vector<16x128xf32>
    %108 = arith.select %20, %106, %107 : vector<16x128xi1>, vector<16x128xf32>
    %109 = arith.addf %105, %101 : vector<16x128xf32>
    %110 = arith.addf %109, %108 : vector<16x128xf32>
    %c8 = arith.constant 8 : index
    %c0_46 = arith.constant 0 : index
    %111 = vector.load %arg6[%c8, %c0_46] : memref<12x128xf32, #tpu.memory_space<vmem>>, vector<1x128xf32>
    %112 = vector.broadcast %111 : vector<1x128xf32> to vector<16x128xf32>
    %113 = arith.mulf %110, %112 : vector<16x128xf32>
    %c9 = arith.constant 9 : index
    %c0_47 = arith.constant 0 : index
    %114 = vector.load %arg6[%c9, %c0_47] : memref<12x128xf32, #tpu.memory_space<vmem>>, vector<1x128xf32>
    %115 = vector.broadcast %114 : vector<1x128xf32> to vector<16x128xf32>
    %116 = arith.addf %113, %115 : vector<16x128xf32>
    %117 = arith.addf %116, %73 : vector<16x128xf32>
    %cst_48 = arith.constant 0.000000e+00 : f32
    %118 = vector.broadcast %cst_48 : f32 to vector<16x128xf32>
    %119 = arith.maximumf %117, %118 : vector<16x128xf32>
    %c0_49 = arith.constant 0 : index
    %c0_50 = arith.constant 0 : index
    %120 = vector.load %arg5[%c0_49, %c0_50] : memref<128x128xf32, #tpu.memory_space<vmem>>, vector<128x128xf32>
    %cst_51 = arith.constant dense<0.000000e+00> : vector<16x128xf32>
    %121 = tpu.matmul %119, %120, %cst_51 {dimension_numbers = #tpu.dot_dimension_numbers<[1], [0], [0], [1], [0, 0, 1, 1], [], []>} : vector<16x128xf32>, vector<128x128xf32>, vector<16x128xf32> -> vector<16x128xf32>
    %122 = arith.addf %96, %121 : vector<16x128xf32>
    %c10 = arith.constant 10 : index
    %c0_52 = arith.constant 0 : index
    %123 = vector.load %arg6[%c10, %c0_52] : memref<12x128xf32, #tpu.memory_space<vmem>>, vector<1x128xf32>
    %124 = vector.broadcast %123 : vector<1x128xf32> to vector<16x128xf32>
    %125 = arith.mulf %122, %124 : vector<16x128xf32>
    %c11 = arith.constant 11 : index
    %c0_53 = arith.constant 0 : index
    %126 = vector.load %arg6[%c11, %c0_53] : memref<12x128xf32, #tpu.memory_space<vmem>>, vector<1x128xf32>
    %127 = vector.broadcast %126 : vector<1x128xf32> to vector<16x128xf32>
    %128 = arith.addf %125, %127 : vector<16x128xf32>
    %cst_54 = arith.constant 0.000000e+00 : f32
    %129 = vector.broadcast %cst_54 : f32 to vector<16x128xf32>
    %130 = arith.maximumf %128, %129 : vector<16x128xf32>
    %c0_55 = arith.constant 0 : index
    %c0_56 = arith.constant 0 : index
    %131 = vector.load %arg7[%c0_55, %c0_56] : memref<16x128xf32, #tpu.memory_space<vmem>>, vector<16x128xf32>
    tpu.vector_store %arg7[%c0_55, %c0_56], %130 {strides = array<i32>} : memref<16x128xf32, #tpu.memory_space<vmem>>, vector<16x128xf32>,
    return
  }
  func.func @transform_0(%arg0: i32) -> (i32, i32) {
    %c0_i32 = arith.constant 0 : i32
    %c0_i32_0 = arith.constant 0 : i32
    return %arg0, %c0_i32 : i32, i32
  }
  func.func @transform_1(%arg0: i32) -> (i32, i32) {
    %c0_i32 = arith.constant 0 : i32
    %c0_i32_0 = arith.constant 0 : i32
    %c0_i32_1 = arith.constant 0 : i32
    return %c0_i32, %c0_i32_0 : i32, i32
  }
  func.func @transform_2(%arg0: i32) -> (i32, i32, i32) {
    %c0_i32 = arith.constant 0 : i32
    %c0_i32_0 = arith.constant 0 : i32
    %c0_i32_1 = arith.constant 0 : i32
    %c0_i32_2 = arith.constant 0 : i32
    return %c0_i32, %c0_i32_0, %c0_i32_1 : i32, i32, i32
  }
  func.func @transform_3(%arg0: i32) -> (i32, i32) {
    %c0_i32 = arith.constant 0 : i32
    %c0_i32_0 = arith.constant 0 : i32
    %c0_i32_1 = arith.constant 0 : i32
    return %c0_i32, %c0_i32_0 : i32, i32
  }
  func.func @transform_4(%arg0: i32) -> (i32, i32) {
    %c0_i32 = arith.constant 0 : i32
    %c0_i32_0 = arith.constant 0 : i32
    %c0_i32_1 = arith.constant 0 : i32
    return %c0_i32, %c0_i32_0 : i32, i32
  }
  func.func @transform_5(%arg0: i32) -> (i32, i32) {
    %c0_i32 = arith.constant 0 : i32
    %c0_i32_0 = arith.constant 0 : i32
    %c0_i32_1 = arith.constant 0 : i32
    return %c0_i32, %c0_i32_0 : i32, i32
  }
  func.func @transform_6(%arg0: i32) -> (i32, i32) {
    %c0_i32 = arith.constant 0 : i32
    %c0_i32_0 = arith.constant 0 : i32
    return %arg0, %c0_i32 : i32, i32
  }
}

</mosaic_0001>

<bundles_post_ra>
// kernel: tree_forward.1
= control target key start
LH: loop header
LB: loop body
LE: loop exit
PB: predicated region body
PF: predicated region fallthrough
CT: control target
= control target key end

     0   :  { %11 = vsyncpa [#allocation3], 0  ;;  %s2279_s0 = inlined_call_operand.vmem [shape: f32[32,64], index: 0, kind: input, shape index: {}]   ;;  %s2280_s1 = inlined_call_operand.hbm [shape: f32[64,512], index: 1, kind: input, shape index: {}]   ;;  %s2281_s2 = inlined_call_operand.hbm [shape: f32[2,128,384], index: 2, kind: input, shape index: {}]   ;;  %s2282_s3 = inlined_call_operand.vmem [shape: f32[128,512], index: 3, kind: input, shape index: {}]   ;;  %s2283_s4 = inlined_call_operand.hbm [shape: f32[128,128], index: 4, kind: input, shape index: {}]   ;;  %s2284_s5 = inlined_call_operand.vmem [shape: f32[12,128], index: 5, kind: input, shape index: {}]   ;;  %s2285_s6 = inlined_call_operand.vmem [shape: f32[32,128], index: 6, kind: output, shape index: {}]  }
   0x1   :  { %12 = vsyncpa [#allocation5], 0  ;;  %s1867_s21 = smov 0  }
   0x2 LB: > { %s1822_s22 = smov [#allocation4]   ;;  %s1490_s24 = sadd.s32 4294967295, %s1820_s21   ;;  %s1820_s21 = sphi %s1867_s21, %s18_s21  }
   0x3   : > { %s205_s23 = sshll.u32 %s1822_s22, 4  ;;  %p1492_p0 = scmp.ge.s32.totalorder %s1820_s21, 1  ;;  %s206_s23 = int_to_ptr.vmem [resolvable:$true] %s205_s23 }
   0x4   : > { %p180_p1 = scmp.lt.s32.totalorder %s1820_s21, 3  ;;  %p1877_p2 = scmp.eq.s32.totalorder %s1490_s24, 0 }
   0x5   : > { %s1823_s27 = smov [#allocation2]   ;;  %s1824_s30 = smov [#allocation6]  }
   0x6   : > { %p1881_p3 = pnand %p1492_p0, %p180_p1  ;;  %s192_s28 = sshll.u32 %s1823_s27, 4  ;;  %s1887_s28 = int_to_ptr.vmem [resolvable:$true] %s192_s28 }
   0x7   : > { %s1895_s7 = sshll.u32 %s1824_s30, 4  ;;  %s1739_s8 = scalar_lea.vmem %s206_s23, 12288  ;;  %s222_s7 = int_to_ptr.vmem [resolvable:$true] %s1895_s7 }
   0x8   : > { %p1694_p4 = pneg %p1881_p3  ;;  %p1740_p7 = scmp.ne.s32.totalorder %s206_s23, %s1739_s8 }
   0x9   : > { %p1747_p10 = scmp.lt.s32.totalorder %s206_s23, %s206_s23  ;;  %p1748_p11 = scmp.lt.s32.totalorder %s1739_s8, %s1739_s8 }
   0xa   : > { %p1891_p5 = pnand %p1877_p2, %p1694_p4 }
   0xb   : > { %p1749_p12 = por %p1748_p11, %p1747_p10 }
   0xc   : > { %p1730_p6 = pneg %p1891_p5 }
   0xe   : > { %p1742_p8 = pnand %p1740_p7, %p1730_p6 }
  0x10   : > { %p1743_p9 = pneg %p1742_p8 }
  0x12   : > { %p1750_p13 = pnand %p1749_p12, %p1743_p9 }
  0x14   : > { %1753 = shalt.err (!%p1750_p13)
}
  0x15   : > { %s1825_s9 = smov 384   ;;  %s1826_s10 = smov 24  }
  0x16   : > { %1700 = dma.hbm_to_vmem [thread:$0]  (!%p1891_p5), %s2281_s2, 12288, %s206_s23, [#allocation5], %s1825_s9, %s1825_s9, %s1826_s10  }
  0x17   : > { %s1765_s13 = scalar_lea.vmem %s1887_s28, 4096  ;;  %p1773_p7 = scmp.lt.s32.totalorder %s1887_s28, %s1887_s28 }
  0x18   : > { %p1766_p0 = scmp.ne.s32.totalorder %s1887_s28, %s1765_s13  ;;  %p1774_p8 = scmp.lt.s32.totalorder %s1765_s13, %s1765_s13 }
  0x1a   : > { %p1768_p1 = pnand %p1766_p0, %p1730_p6  ;;  %p1775_p9 = por %p1774_p8, %p1773_p7 }
  0x1c   : > { %p1769_p4 = pneg %p1768_p1 }
  0x1e   : > { %p1776_p10 = pnand %p1775_p9, %p1769_p4 }
  0x20   : > { %1779 = shalt.err (!%p1776_p10)
}
  0x21   : > { %s1827_s14 = smov 512   ;;  %s1828_s15 = smov 32  }
  0x22   : > { %1697 = dma.hbm_to_vmem [thread:$0]  (!%p1891_p5), %s2280_s1, 4096, %s1887_s28, [#allocation3], %s1827_s14, %s1827_s14, %s1828_s15  }
  0x23   : > { %s1791_s18 = scalar_lea.vmem %s222_s7, 2048  ;;  %p1799_p0 = scmp.lt.s32.totalorder %s222_s7, %s222_s7 }
  0x24   : > { %p1792_p11 = scmp.ne.s32.totalorder %s222_s7, %s1791_s18  ;;  %p1800_p1 = scmp.lt.s32.totalorder %s1791_s18, %s1791_s18 }
  0x26   : > { %p1794_p12 = pnand %p1792_p11, %p1730_p6  ;;  %p1801_p4 = por %p1800_p1, %p1799_p0 }
  0x28   : > { %p1795_p13 = pneg %p1794_p12 }
  0x2a   : > { %p1802_p7 = pnand %p1801_p4, %p1795_p13 }
  0x2c   : > { %1805 = shalt.err (!%p1802_p7)
}
  0x2d   : > { %s1829_s19 = smov 128   ;;  %s1830_s20 = smov 8  }
  0x2e   : > { %1703 = dma.hbm_to_vmem [thread:$0]  (!%p1891_p5), %s2283_s4, 2048, %s222_s7, [#allocation5], %s1829_s19, %s1829_s19, %s1830_s20  }
  0x2f   : > { %249 = sbr.rel (%p1881_p3) target bundleno = 1139 (0x473), region = 44 }
  0x34   : > { %1811 = dma.done.wait (%p1877_p2), [#allocation3], 4096  }
  0x35   : > { %1813 = vsyncadd (%p1877_p2), [#allocation3], 4294963200 }
  0x36   : > { %1815 = dma.done.wait (%p1877_p2), [#allocation5], 14336  }
  0x37   : > { %1817 = vsyncadd (%p1877_p2), [#allocation5], 4294952960  ;;  %v1831_v0 = vmov 0.0   ;;  %s1501_s26 = sshll.u32 %s1490_s24, 1  ;;  %v361_v1 = vld [vmem:[#allocation2 + $0xe8] sm:$0xff]  ;;  %v360_v2 = vld [vmem:[#allocation2 + $0xe0] sm:$0xff] }
  0x38   : > { %435 = vmatprep.mubr.f32.mxu1 %v1831_v0  ;;  %685 = vmatprep.mubr.f32.mxu0 %v1831_v0  ;;  %v357_v3 = vld [vmem:[#allocation2 + $0xc8] sm:$0xff]  ;;  %p288_p3 = scmp.lt.s32.totalorder %s1501_s26, 3  ;;  %v356_v4 = vld [vmem:[#allocation2 + $0xc0] sm:$0xff]  ;;  %vm364_vm0 = vcmask 523264   ;;  %v363_v18 = vld [vmem:[#allocation2 + $0xf8] sm:$0xff] }
  0x39   : > { %387 = vmatprep.subr.mxu1 %v361_v1  ;;  %v353_v5 = vld [vmem:[#allocation2 + $0xa8] sm:$0xff]  ;;  %v352_v6 = vld [vmem:[#allocation2 + $0xa0] sm:$0xff]  ;;  %v362_v19 = vld [vmem:[#allocation2 + $0xf0] sm:$0xff] }
  0x3a   : > { %388 = vmatpush1.msra.mxu1 %v360_v2  ;;  %v349_v7 = vld [vmem:[#allocation2 + $0x88] sm:$0xff]  ;;  %s2294_s26 = smov (!%p288_p3, %s1501_s26), 3  ;;  %v348_v8 = vld [vmem:[#allocation2 + $0x80] sm:$0xff]  ;;  %v359_v20 = vld [vmem:[#allocation2 + $0xd8] sm:$0xff] }
  0x3b   : > { %389 = vmatprep.subr.mxu1 %v357_v3  ;;  %v345_v9 = vld [vmem:[#allocation2 + $0x68] sm:$0xff]  ;;  %v344_v10 = vld [vmem:[#allocation2 + $0x60] sm:$0xff]  ;;  %s1502_s24 = sshll.u32 %s2294_s26, 3  ;;  %v358_v21 = vld [vmem:[#allocation2 + $0xd0] sm:$0xff] }
  0x3c   : > { %390 = vmatpush1.msra.mxu1 %v356_v4  ;;  %v341_v11 = vld [vmem:[#allocation2 + $0x48] sm:$0xff]  ;;  %v340_v12 = vld [vmem:[#allocation2 + $0x40] sm:$0xff]  ;;  %s291_s28 = scalar_lea.vmem %s2279_s0, %s1502_s24  ;;  %v355_v23 = vld [vmem:[#allocation2 + $0xb8] sm:$0xff]  ;;  %s297_s12 = scalar_lea.vmem %s2285_s6, %s1502_s24 }
  0x3d   : > { %391 = vmatprep.subr.mxu1 %v353_v5  ;;  %v337_v13 = vld [vmem:[#allocation2 + $0x28] sm:$0xff]  ;;  %v336_v14 = vld [vmem:[#allocation2 + $0x20] sm:$0xff]  ;;  %v354_v24 = vld [vmem:[#allocation2 + $0xb0] sm:$0xff] }
  0x3e   : > { %392 = vmatpush1.msra.mxu1 %v352_v6  ;;  %v333_v15 = vld [vmem:[#allocation2 + $0x8] sm:$0xff]  ;;  %v332_v16 = vld [vmem:[#allocation2] sm:$0xff]  ;;  %v351_v25 = vld [vmem:[#allocation2 + $0x98] sm:$0xff] }
  0x3f   : > { %393 = vmatprep.subr.mxu1 %v349_v7  ;;  %v330_v17 = vld [vmem:[%s291_s28] sm:$0xff]  ;;  %v331_v22 = vld [vmem:[%s291_s28 + $0x8] sm:$0xff]  ;;  %v350_v26 = vld [vmem:[#allocation2 + $0x90] sm:$0xff] }
  0x40   : > { %394 = vmatpush1.msra.mxu1 %v348_v8  ;;  %v347_v27 = vld [vmem:[#allocation2 + $0x78] sm:$0xff]  ;;  %v346_v28 = vld [vmem:[#allocation2 + $0x70] sm:$0xff]  ;;  %v618_v36 = vld [vmem:[#allocation4 + $0x168] sm:$0xff] }
  0x41   : > { %395 = vmatprep.subr.mxu1 %v345_v9  ;;  %v343_v29 = vld [vmem:[#allocation2 + $0x58] sm:$0xff]  ;;  %v342_v30 = vld [vmem:[#allocation2 + $0x50] sm:$0xff]  ;;  %v617_v40 = vld [vmem:[#allocation4 + $0x160] sm:$0xff] }
  0x42   : > { %396 = vmatpush1.msra.mxu1 %v344_v10  ;;  %v339_v31 = vld [vmem:[#allocation2 + $0x38] sm:$0xff]  ;;  %v338_v32 = vld [vmem:[#allocation2 + $0x30] sm:$0xff]  ;;  %v613_v41 = vld [vmem:[#allocation4 + $0x140] sm:$0xff] }
  0x43   : > { %397 = vmatprep.subr.mxu1 %v341_v11  ;;  %v335_v33 = vld [vmem:[#allocation2 + $0x18] sm:$0xff]  ;;  %v334_v34 = vld [vmem:[#allocation2 + $0x10] sm:$0xff]  ;;  %v614_v43 = vld [vmem:[#allocation4 + $0x148] sm:$0xff] }
  0x44   : > { %398 = vmatpush1.msra.mxu1 %v340_v12  ;;  %v619_v35 = vld [vmem:[#allocation4 + $0x170] sm:$0xff]  ;;  %v620_v37 = vld [vmem:[#allocation4 + $0x178] sm:$0xff]  ;;  %v610_v44 = vld [vmem:[#allocation4 + $0x128] sm:$0xff] }
  0x45   : > { %399 = vmatprep.subr.mxu1 %v337_v13  ;;  %621 = vmatprep.subr.mxu0 %v619_v35  ;;  %v616_v38 = vld [vmem:[#allocation4 + $0x158] sm:$0xff]  ;;  %v615_v39 = vld [vmem:[#allocation4 + $0x150] sm:$0xff]  ;;  %v609_v45 = vld [vmem:[#allocation4 + $0x120] sm:$0xff] }
  0x46   : > { %400 = vmatpush1.msra.mxu1 %v336_v14  ;;  %622 = vmatpush1.msra.mxu0 %v618_v36  ;;  %v612_v42 = vld [vmem:[#allocation4 + $0x138] sm:$0xff]  ;;  %v611_v46 = vld [vmem:[#allocation4 + $0x130] sm:$0xff]  ;;  %v606_v48 = vld [vmem:[#allocation4 + $0x108] sm:$0xff] }
  0x47   : > { %401 = vmatprep.subr.mxu1 %v333_v15  ;;  %623 = vmatprep.subr.mxu0 %v616_v38  ;;  %v607_v47 = vld [vmem:[#allocation4 + $0x110] sm:$0xff]  ;;  %v608_v49 = vld [vmem:[#allocation4 + $0x118] sm:$0xff]  ;;  %v605_v52 = vld [vmem:[#allocation4 + $0x100] sm:$0xff] }
  0x48   : > { %402 = vmatpush1.msra.mxu1 %v332_v16  ;;  %624 = vmatpush1.msra.mxu0 %v615_v39  ;;  %v604_v50 = vld [vmem:[#allocation4 + $0xf8] sm:$0xff]  ;;  %v603_v51 = vld [vmem:[#allocation4 + $0xf0] sm:$0xff]  ;;  %v601_v53 = vld [vmem:[#allocation4 + $0xe0] sm:$0xff] }
  0x49   : > { %1505 = vmatmul.mubr.msk.f32.vlgmr.msra.gmra.mxu1 %vm364_vm0, %v330_v17  ;;  %464 = vmatprep.subr.mxu1 %v363_v18  ;;  %v600_v54 = vld [vmem:[#allocation4 + $0xd8] sm:$0xff]  ;;  %v602_v55 = vld [vmem:[#allocation4 + $0xe8] sm:$0xff]  ;;  %v597_v57 = vld [vmem:[#allocation4 + $0xc0] sm:$0xff] }
  0x4a   : > { %465 = vmatpush1.msra.mxu1 %v362_v19  ;;  %441 = vmatprep.mubr.f32.mxu1 %v1831_v0  ;;  %v598_v56 = vld [vmem:[#allocation4 + $0xc8] sm:$0xff]  ;;  %v599_v58 = vld [vmem:[#allocation4 + $0xd0] sm:$0xff]  ;;  %v596_v61 = vld [vmem:[#allocation4 + $0xb8] sm:$0xff] }
  0x4b   : > { %466 = vmatprep.subr.mxu1 %v359_v20  ;;  %625 = vmatprep.subr.mxu0 %v613_v41  ;;  %v595_v59 = vld [vmem:[#allocation4 + $0xb0] sm:$0xff]  ;;  %v594_v60 = vld [vmem:[#allocation4 + $0xa8] sm:$0xff]  ;;  %v592_v62 = vld [vmem:[#allocation4 + $0x98] sm:$0xff] }
  0x4c   : > { %467 = vmatpush1.msra.mxu1 %v358_v21  ;;  %626 = vmatpush1.msra.mxu0 %v612_v42  ;;  %v591_v63 = vld [vmem:[#allocation4 + $0x90] sm:$0xff]  ;;  %v593_v1 = vld [vmem:[#allocation4 + $0xa0] sm:$0xff]  ;;  %v588_v3 = vld [vmem:[#allocation4 + $0x78] sm:$0xff] }
  0x4d   : > { %1506 = vmatmul.mubr.msk.f32.gmra.mxu1 %vm364_vm0, %v331_v22  ;;  %468 = vmatprep.subr.mxu1 %v355_v23  ;;  %v589_v2 = vld [vmem:[#allocation4 + $0x80] sm:$0xff]  ;;  %v590_v4 = vld [vmem:[#allocation4 + $0x88] sm:$0xff]  ;;  %v587_v7 = vld [vmem:[#allocation4 + $0x70] sm:$0xff]  ;;  %v299_v23 = vlaneseq }
  0x4e   : > { %469 = vmatpush1.msra.mxu1 %v354_v24  ;;  %512 = vmatprep.mubr.f32.mxu1 %v1831_v0  ;;  %v586_v5 = vld [vmem:[#allocation4 + $0x68] sm:$0xff]  ;;  %v585_v6 = vld [vmem:[#allocation4 + $0x60] sm:$0xff]  ;;  %v583_v8 = vld [vmem:[#allocation4 + $0x50] sm:$0xff] }
  0x4f   : > { %470 = vmatprep.subr.mxu1 %v351_v25  ;;  %627 = vmatprep.subr.mxu0 %v610_v44  ;;  %v582_v9 = vld [vmem:[#allocation4 + $0x48] sm:$0xff]  ;;  %v584_v10 = vld [vmem:[#allocation4 + $0x58] sm:$0xff]  ;;  %v579_v12 = vld [vmem:[#allocation4 + $0x30] sm:$0xff]  ;;  %v1964_v25 = vshrl.u32 %v299_v23, 7 }
  0x50   : > { %471 = vmatpush1.msra.mxu1 %v350_v26  ;;  %628 = vmatpush1.msra.mxu0 %v609_v45  ;;  %v580_v11 = vld [vmem:[#allocation4 + $0x38] sm:$0xff]  ;;  %v581_v13 = vld [vmem:[#allocation4 + $0x40] sm:$0xff]  ;;  %v578_v16 = vld [vmem:[#allocation4 + $0x28] sm:$0xff] }
  0x51   : > { %472 = vmatprep.subr.mxu1 %v347_v27  ;;  %629 = vmatprep.subr.mxu0 %v607_v47  ;;  %v577_v14 = vld [vmem:[#allocation4 + $0x20] sm:$0xff]  ;;  %v576_v15 = vld [vmem:[#allocation4 + $0x18] sm:$0xff]  ;;  %v575_v19 = vld [vmem:[#allocation4 + $0x10] sm:$0xff]  ;;  %v306_v27 = vand.u32 15, %v1964_v25  ;;  %vm527_vm1 = vcmp.lt.s32.totalorder %v1964_v25, 1  ;;  %vm534_vm3 = vcmp.lt.s32.totalorder %v1964_v25, 7 }
  0x52   : > { %473 = vmatpush1.msra.mxu1 %v346_v28  ;;  %630 = vmatpush1.msra.mxu0 %v606_v48  ;;  %v573_v18 = vld [vmem:[#allocation4] sm:$0xff]  ;;  %v868_v20 = vld [vmem:[%s2282_s3 + $0x1e8] sm:$0xff]  ;;  %v870_v21 = vld [vmem:[%s2282_s3 + $0x1f8] sm:$0xff] }
  0x53   : > { %474 = vmatprep.subr.mxu1 %v343_v29  ;;  %631 = vmatprep.subr.mxu0 %v604_v50  ;;  %v301_v29 = vadd.s32 8, %v1964_v25  ;;  %vm1969_vm2 = vcmp.ne.s32.totalorder %v306_v27, 0  ;;  %v1509_v47 = vld [vmem:[%s2284_s5] ss:$0 sm:$0xff]  ;;  %v838_v27 = vld [vmem:[%s2282_s3 + $0xf8] sm:$0xff] }
  0x54   : > { %475 = vmatpush1.msra.mxu1 %v342_v30  ;;  %632 = vmatpush1.msra.mxu0 %v603_v51  ;;  %v1510_v51 = vld [vmem:[%s2284_s5 + $0x1] ss:$0 sm:$0xff] }
  0x55   : > { %476 = vmatprep.subr.mxu1 %v339_v31  ;;  %633 = vmatprep.subr.mxu0 %v601_v53  ;;  %v313_v35 = vand.u32 15, %v301_v29  ;;  %v839_v23 = vld [vmem:[%s2282_s3 + $0x100] sm:$0xff]  ;;  %v837_v29 = vld [vmem:[%s2282_s3 + $0xf0] sm:$0xff] }
  0x56   : > { %477 = vmatpush1.msra.mxu1 %v338_v32  ;;  %634 = vmatpush1.msra.mxu0 %v600_v54 }
  0x57   : > { %478 = vmatprep.subr.mxu1 %v335_v33  ;;  %635 = vmatprep.subr.mxu0 %v598_v56  ;;  %vm1982_vm4 = vcmp.ne.s32.totalorder %v313_v35, 15  ;;  %v828_v35 = vld [vmem:[%s2282_s3 + $0xa8] sm:$0xff] }
  0x58   : > { %479 = vmatpush1.msra.mxu1 %v334_v34  ;;  %636 = vmatpush1.msra.mxu0 %v597_v57 }
  0x59   : > { %1507 = vmatmul.mubr.msk.f32.vlgmr.msra.gmra.mxu1 %vm364_vm0, %v330_v17  ;;  %1577 = vmatprep.subr.mxu1 %v620_v37  ;;  %v574_v17 = vld [vmem:[#allocation4 + $0x8] sm:$0xff] }
  0x5a   : > { %518 = vmatprep.mubr.f32.mxu1 %v1831_v0  ;;  %1578 = vmatpush3.msra.mxu1 %v620_v37 }
  0x5b   : > { %1579 = vmatprep.subr.mxu1 %v617_v40  ;;  %637 = vmatprep.subr.mxu0 %v595_v59  ;;  %v869_v59 = vld [vmem:[%s2282_s3 + $0x1f0] sm:$0xff] }
  0x5c   : > { %1580 = vmatpush3.msra.mxu1 %v617_v40  ;;  %638 = vmatpush1.msra.mxu0 %v594_v60  ;;  %v864_v60 = vld [vmem:[%s2282_s3 + $0x1c8] sm:$0xff] }
  0x5d   : > { %1508 = vmatmul.mubr.msk.f32.gmra.mxu1 %vm364_vm0, %v331_v22  ;;  %1581 = vmatprep.subr.mxu1 %v614_v43 }
  0x5e   : > { %1582 = vmatpush3.msra.mxu1 %v614_v43  ;;  %639 = vmatprep.subr.mxu0 %v592_v62  ;;  %v865_v62 = vld [vmem:[%s2282_s3 + $0x1d0] sm:$0xff] }
  0x5f   : > { %1583 = vmatprep.subr.mxu1 %v611_v46  ;;  %640 = vmatpush1.msra.mxu0 %v591_v63  ;;  %v863_v63 = vld [vmem:[%s2282_s3 + $0x1c0] sm:$0xff] }
  0x60   : > { %1584 = vmatpush3.msra.mxu1 %v611_v46  ;;  %641 = vmatprep.subr.mxu0 %v589_v2  ;;  %v860_v2 = vld [vmem:[%s2282_s3 + $0x1a8] sm:$0xff] }
  0x61   : > { %1585 = vmatprep.subr.mxu1 %v608_v49  ;;  %642 = vmatpush1.msra.mxu0 %v588_v3  ;;  %v861_v3 = vld [vmem:[%s2282_s3 + $0x1b0] sm:$0xff] }
  0x62   : > { %1586 = vmatpush3.msra.mxu1 %v608_v49  ;;  %643 = vmatprep.subr.mxu0 %v586_v5  ;;  %v858_v5 = vld [vmem:[%s2282_s3 + $0x198] sm:$0xff] }
  0x63   : > { %1587 = vmatprep.subr.mxu1 %v605_v52  ;;  %644 = vmatpush1.msra.mxu0 %v585_v6  ;;  %v856_v6 = vld [vmem:[%s2282_s3 + $0x188] sm:$0xff] }
  0x64   : > { %1588 = vmatpush3.msra.mxu1 %v605_v52  ;;  %645 = vmatprep.subr.mxu0 %v583_v8  ;;  %v855_v8 = vld [vmem:[%s2282_s3 + $0x180] sm:$0xff] }
  0x65   : > { %1589 = vmatprep.subr.mxu1 %v602_v55  ;;  %646 = vmatpush1.msra.mxu0 %v582_v9  ;;  %v854_v9 = vld [vmem:[%s2282_s3 + $0x178] sm:$0xff] }
  0x66   : > { %1590 = vmatpush3.msra.mxu1 %v602_v55  ;;  %647 = vmatprep.subr.mxu0 %v580_v11  ;;  %v853_v11 = vld [vmem:[%s2282_s3 + $0x170] sm:$0xff] }
  0x67   : > { %1591 = vmatprep.subr.mxu1 %v599_v58  ;;  %648 = vmatpush1.msra.mxu0 %v579_v12  ;;  %v851_v12 = vld [vmem:[%s2282_s3 + $0x160] sm:$0xff] }
  0x68   : > { %1592 = vmatpush3.msra.mxu1 %v599_v58  ;;  %649 = vmatprep.subr.mxu0 %v577_v14  ;;  %v867_v58 = vld [vmem:[%s2282_s3 + $0x1e0] sm:$0xff]  ;;  %v848_v14 = vld [vmem:[%s2282_s3 + $0x148] sm:$0xff] }
  0x69   : > { %1593 = vmatprep.subr.mxu1 %v596_v61  ;;  %650 = vmatpush1.msra.mxu0 %v576_v15  ;;  %v847_v15 = vld [vmem:[%s2282_s3 + $0x140] sm:$0xff] }
  0x6a   : > { %1594 = vmatpush3.msra.mxu1 %v596_v61  ;;  %651 = vmatprep.subr.mxu0 %v574_v17  ;;  %v866_v61 = vld [vmem:[%s2282_s3 + $0x1d8] sm:$0xff]  ;;  %v844_v17 = vld [vmem:[%s2282_s3 + $0x128] sm:$0xff] }
  0x6b   : > { %1595 = vmatprep.subr.mxu1 %v593_v1  ;;  %652 = vmatpush1.msra.mxu0 %v573_v18  ;;  %v846_v18 = vld [vmem:[%s2282_s3 + $0x138] sm:$0xff] }
  0x6c   : > { %1596 = vmatpush3.msra.mxu1 %v593_v1  ;;  %871 = vmatprep.subr.mxu0 %v868_v20  ;;  %v862_v1 = vld [vmem:[%s2282_s3 + $0x1b8] sm:$0xff]  ;;  %v845_v20 = vld [vmem:[%s2282_s3 + $0x130] sm:$0xff] }
  0x6d   : > { %1597 = vmatprep.subr.mxu1 %v590_v4 }
  0x6e   : > { %1598 = vmatpush3.msra.mxu1 %v590_v4  ;;  %v859_v4 = vld [vmem:[%s2282_s3 + $0x1a0] sm:$0xff] }
  0x6f   : > { %1599 = vmatprep.subr.mxu1 %v587_v7 }
  0x70   : > { %1600 = vmatpush3.msra.mxu1 %v587_v7  ;;  %v857_v7 = vld [vmem:[%s2282_s3 + $0x190] sm:$0xff] }
  0x71   : > { %1601 = vmatprep.subr.mxu1 %v584_v10 }
  0x72   : > { %1602 = vmatpush3.msra.mxu1 %v584_v10  ;;  %v852_v10 = vld [vmem:[%s2282_s3 + $0x168] sm:$0xff] }
  0x73   : > { %1603 = vmatprep.subr.mxu1 %v581_v13 }
  0x74   : > { %1604 = vmatpush3.msra.mxu1 %v581_v13  ;;  %v850_v13 = vld [vmem:[%s2282_s3 + $0x158] sm:$0xff] }
  0x75   : > { %1605 = vmatprep.subr.mxu1 %v578_v16 }
  0x76   : > { %1606 = vmatpush3.msra.mxu1 %v578_v16  ;;  %v849_v16 = vld [vmem:[%s2282_s3 + $0x150] sm:$0xff] }
  0x77   : > { %1607 = vmatprep.subr.mxu1 %v575_v19 }
  0x78   : > { %1608 = vmatpush3.msra.mxu1 %v575_v19  ;;  %v843_v19 = vld [vmem:[%s2282_s3 + $0x120] sm:$0xff] }
  0x79   : > { %948 = vmatprep.subr.mxu1 %v870_v21  ;;  %v840_v21 = vld [vmem:[%s2282_s3 + $0x108] sm:$0xff] }
 0x109   : > { %v437_v22 = vpop.f32.mrf.mxu1 }
 0x10a   : > { %v525_v30 = vrot.slane %v437_v22, 7  ;;  %v842_v22 = vld [vmem:[%s2282_s3 + $0x118] sm:$0xff] }
 0x10b   : > { %v439_v24 = vpop.f32.mrf.mxu1 }
 0x10d   : > { %v443_v26 = vpop.f32.mrf.mxu1 }
 0x10e   : > { %v526_v28 = vrot.slane %v443_v26, 7  ;;  %v836_v26 = vld [vmem:[%s2282_s3 + $0xe8] sm:$0xff] }
 0x10f   : > { %v445_v31 = vpop.f32.mrf.mxu1 }
 0x110   : > { %v529_v33 = vsel %vm527_vm1, %v526_v28, %v525_v30  ;;  %v528_v38 = vsel %vm527_vm1, %v525_v30, %v526_v28  ;;  %v835_v28 = vld [vmem:[%s2282_s3 + $0xe0] sm:$0xff]  ;;  %v832_v30 = vld [vmem:[%s2282_s3 + $0xc8] sm:$0xff] }
 0x111   : > { %v530_v37 = vsel %vm1969_vm2, %v529_v33, 0.0  ;;  %v540_v44 = vadd.f32 %v528_v38, %v445_v31  ;;  %v834_v31 = vld [vmem:[%s2282_s3 + $0xd8] sm:$0xff]  ;;  %v831_v33 = vld [vmem:[%s2282_s3 + $0xc0] sm:$0xff] }
 0x112   : > { %v539_v43 = vadd.f32 %v530_v37, %v439_v24  ;;  %v841_v24 = vld [vmem:[%s2282_s3 + $0x110] sm:$0xff]  ;;  %v830_v37 = vld [vmem:[%s2282_s3 + $0xb8] sm:$0xff]  ;;  %v827_v38 = vld [vmem:[%s2282_s3 + $0xa0] sm:$0xff] }
 0x119   : > { %v514_v34 = vpop.f32.mrf.mxu1 }
 0x11a   : > { %v532_v40 = vrot.slane %v514_v34, 1  ;;  %v833_v34 = vld [vmem:[%s2282_s3 + $0xd0] sm:$0xff] }
 0x11b   : > { %v1975_v36 = vpop.f32.mrf.mxu1 }
 0x11d   : > { %v520_v39 = vpop.f32.mrf.mxu1 }
 0x11e   : > { %v533_v42 = vrot.slane %v520_v39, 1  ;;  %v829_v39 = vld [vmem:[%s2282_s3 + $0xb0] sm:$0xff] }
 0x120   : > { %v535_v45 = vsel %vm534_vm3, %v532_v40, %v533_v42  ;;  %v536_v46 = vsel %vm534_vm3, %v533_v42, %v532_v40  ;;  %v824_v40 = vld [vmem:[%s2282_s3 + $0x88] sm:$0xff]  ;;  %v826_v42 = vld [vmem:[%s2282_s3 + $0x98] sm:$0xff] }
 0x121   : > { %v538_v48 = vsel %vm1982_vm4, %v536_v46, 0.0  ;;  %v541_v49 = vadd.f32 %v539_v43, %v535_v45  ;;  %v823_v43 = vld [vmem:[%s2282_s3 + $0x80] sm:$0xff]  ;;  %v820_v45 = vld [vmem:[%s2282_s3 + $0x68] sm:$0xff]  ;;  %v822_v46 = vld [vmem:[%s2282_s3 + $0x78] sm:$0xff] }
 0x122   : > { %v542_v50 = vadd.f32 %v540_v44, %v538_v48  ;;  %v825_v44 = vld [vmem:[%s2282_s3 + $0x90] sm:$0xff] }
 0x123   : > { %v548_v52 = vmul.f32 %v1509_v47, %v541_v49  ;;  %v821_v48 = vld [vmem:[%s2282_s3 + $0x70] sm:$0xff]  ;;  %v816_v49 = vld [vmem:[%s2282_s3 + $0x48] sm:$0xff] }
 0x124   : > { %v549_v53 = vmul.f32 %v1509_v47, %v542_v50  ;;  %v819_v47 = vld [vmem:[%s2282_s3 + $0x60] sm:$0xff]  ;;  %v818_v50 = vld [vmem:[%s2282_s3 + $0x58] sm:$0xff] }
 0x125   : > { %v555_v54 = vadd.f32 %v1510_v51, %v548_v52  ;;  %v817_v52 = vld [vmem:[%s2282_s3 + $0x50] sm:$0xff] }
 0x126   : > { %v556_v55 = vadd.f32 %v1510_v51, %v549_v53  ;;  %v815_v51 = vld [vmem:[%s2282_s3 + $0x40] sm:$0xff]  ;;  %v812_v53 = vld [vmem:[%s2282_s3 + $0x28] sm:$0xff] }
 0x127   : > { %v557_v56 = vmax.f32 %v555_v54, 0.0  ;;  %v814_v54 = vld [vmem:[%s2282_s3 + $0x38] sm:$0xff] }
 0x128   : > { %v558_v57 = vmax.f32 %v556_v55, 0.0  ;;  %v811_v55 = vld [vmem:[%s2282_s3 + $0x20] sm:$0xff] }
 0x129   : > { %686 = vmatmul.mubr.f32.vlgmr.msra.gmra.mxu0 %v557_v56  ;;  %1609 = vmatprep.mubr.f32.mxu1 %v557_v56  ;;  %v813_v56 = vld [vmem:[%s2282_s3 + $0x30] sm:$0xff] }
 0x12a   : > { %1610 = vmatmul.mubr.f32.vlgmr.msra.gmra.mxu1 %v558_v57  ;;  %691 = vmatprep.mubr.f32.mxu0 %v1831_v0 }
 0x12b   : > { %872 = vmatpush1.msra.mxu0 %v867_v58  ;;  %949 = vmatpush1.msra.mxu1 %v869_v59  ;;  %v810_v58 = vld [vmem:[%s2282_s3 + $0x18] sm:$0xff]  ;;  %v807_v59 = vld [vmem:[%s2282_s3] sm:$0xff] }
 0x12c   : > { %873 = vmatprep.subr.mxu0 %v864_v60  ;;  %950 = vmatprep.subr.mxu1 %v866_v61  ;;  %v809_v60 = vld [vmem:[%s2282_s3 + $0x10] sm:$0xff] }
 0x12d   : > { %692 = vmatmul.mubr.f32.gmra.mxu0 %v558_v57  ;;  %951 = vmatpush1.msra.mxu1 %v865_v62  ;;  %v808_v57 = vld [vmem:[%s2282_s3 + $0x8] sm:$0xff]  ;;  %v1104_v61 = vld [vmem:[#allocation4 + $0x2f0] sm:$0xff]  ;;  %v1105_v62 = vld [vmem:[#allocation4 + $0x2f8] sm:$0xff] }
 0x12e   : > { %874 = vmatpush1.msra.mxu0 %v863_v63  ;;  %952 = vmatprep.subr.mxu1 %v862_v1  ;;  %v522_v63 = vpop.f32.mrf.mxu1 }
 0x12f   : > { %875 = vmatprep.subr.mxu0 %v860_v2  ;;  %953 = vmatpush1.msra.mxu1 %v861_v3 }
 0x130   : > { %876 = vmatpush1.msra.mxu0 %v859_v4  ;;  %954 = vmatprep.subr.mxu1 %v858_v5 }
 0x131   : > { %877 = vmatprep.subr.mxu0 %v856_v6  ;;  %955 = vmatpush1.msra.mxu1 %v857_v7 }
 0x132   : > { %878 = vmatpush1.msra.mxu0 %v855_v8  ;;  %956 = vmatprep.subr.mxu1 %v854_v9 }
 0x133   : > { %879 = vmatprep.subr.mxu0 %v852_v10  ;;  %957 = vmatpush1.msra.mxu1 %v853_v11 }
 0x134   : > { %880 = vmatpush1.msra.mxu0 %v851_v12  ;;  %958 = vmatprep.subr.mxu1 %v850_v13 }
 0x135   : > { %881 = vmatprep.subr.mxu0 %v848_v14  ;;  %935 = vmatprep.mubr.f32.mxu0 %v1831_v0  ;;  %v1511_v14 = vld [vmem:[%s2284_s5 + $0x2] ss:$0 sm:$0xff] }
 0x136   : > { %1012 = vmatprep.mubr.f32.mxu1 %v1831_v0  ;;  %882 = vmatpush1.msra.mxu0 %v847_v15 }
 0x137   : > { %959 = vmatpush1.msra.mxu1 %v849_v16  ;;  %883 = vmatprep.subr.mxu0 %v844_v17 }
 0x138   : > { %960 = vmatprep.subr.mxu1 %v846_v18  ;;  %884 = vmatpush1.msra.mxu0 %v843_v19  ;;  %v1513_v19 = vld [vmem:[%s2284_s5 + $0x4] ss:$0 sm:$0xff] }
 0x139   : > { %961 = vmatpush1.msra.mxu1 %v845_v20  ;;  %885 = vmatprep.subr.mxu0 %v840_v21 }
 0x13a   : > { %962 = vmatprep.subr.mxu1 %v842_v22  ;;  %886 = vmatpush1.msra.mxu0 %v839_v23  ;;  %v564_v22 = vmul.f32 %v1511_v14, %v1975_v36 }
 0x13b   : > { %963 = vmatpush1.msra.mxu1 %v841_v24  ;;  %887 = vmatprep.subr.mxu0 %v836_v26  ;;  %v1512_v24 = vld [vmem:[%s2284_s5 + $0x3] ss:$0 sm:$0xff] }
 0x13c   : > { %964 = vmatprep.subr.mxu1 %v838_v27  ;;  %888 = vmatpush1.msra.mxu0 %v835_v28  ;;  %v1514_v27 = vld [vmem:[%s2284_s5 + $0x5] ss:$0 sm:$0xff]  ;;  %v565_v28 = vmul.f32 %v1511_v14, %v522_v63  ;;  %v1079_v63 = vld [vmem:[#allocation4 + $0x228] sm:$0xff]  ;;  %v1065_v14 = vld [vmem:[#allocation4 + $0x1b8] sm:$0xff] }
 0x13d   : > { %965 = vmatpush1.msra.mxu1 %v837_v29  ;;  %889 = vmatprep.subr.mxu0 %v832_v30  ;;  %v571_v30 = vadd.f32 %v1512_v24, %v564_v22  ;;  %v1060_v22 = vld [vmem:[#allocation4 + $0x190] sm:$0xff] }
 0x13e   : > { %966 = vmatprep.subr.mxu1 %v834_v31  ;;  %890 = vmatpush1.msra.mxu0 %v831_v33 }
 0x13f   : > { %967 = vmatpush1.msra.mxu1 %v833_v34  ;;  %891 = vmatprep.subr.mxu0 %v828_v35  ;;  %v572_v34 = vadd.f32 %v1512_v24, %v565_v28 }
 0x140   : > { %968 = vmatprep.subr.mxu1 %v830_v37  ;;  %892 = vmatpush1.msra.mxu0 %v827_v38  ;;  %v1103_v38 = vld [vmem:[#allocation4 + $0x2e8] sm:$0xff] }
 0x141   : > { %969 = vmatpush1.msra.mxu1 %v829_v39  ;;  %893 = vmatprep.subr.mxu0 %v824_v40  ;;  %v1101_v39 = vld [vmem:[#allocation4 + $0x2d8] sm:$0xff]  ;;  %v1102_v40 = vld [vmem:[#allocation4 + $0x2e0] sm:$0xff] }
 0x142   : > { %970 = vmatprep.subr.mxu1 %v826_v42  ;;  %894 = vmatpush1.msra.mxu0 %v823_v43  ;;  %v1100_v43 = vld [vmem:[#allocation4 + $0x2d0] sm:$0xff] }
 0x143   : > { %971 = vmatpush1.msra.mxu1 %v825_v44  ;;  %895 = vmatprep.subr.mxu0 %v820_v45  ;;  %v1098_v44 = vld [vmem:[#allocation4 + $0x2c0] sm:$0xff]  ;;  %v1099_v45 = vld [vmem:[#allocation4 + $0x2c8] sm:$0xff] }
 0x144   : > { %972 = vmatprep.subr.mxu1 %v822_v46  ;;  %896 = vmatpush1.msra.mxu0 %v819_v47  ;;  %v1097_v46 = vld [vmem:[#allocation4 + $0x2b8] sm:$0xff]  ;;  %v1095_v47 = vld [vmem:[#allocation4 + $0x2a8] sm:$0xff] }
 0x145   : > { %973 = vmatpush1.msra.mxu1 %v821_v48  ;;  %897 = vmatprep.subr.mxu0 %v816_v49  ;;  %v1096_v48 = vld [vmem:[#allocation4 + $0x2b0] sm:$0xff]  ;;  %v1094_v49 = vld [vmem:[#allocation4 + $0x2a0] sm:$0xff] }
 0x146   : > { %974 = vmatprep.subr.mxu1 %v818_v50  ;;  %898 = vmatpush1.msra.mxu0 %v815_v51  ;;  %v1092_v50 = vld [vmem:[#allocation4 + $0x290] sm:$0xff]  ;;  %v1093_v51 = vld [vmem:[#allocation4 + $0x298] sm:$0xff] }
 0x147   : > { %975 = vmatpush1.msra.mxu1 %v817_v52  ;;  %899 = vmatprep.subr.mxu0 %v812_v53  ;;  %v1091_v52 = vld [vmem:[#allocation4 + $0x288] sm:$0xff]  ;;  %v1089_v53 = vld [vmem:[#allocation4 + $0x278] sm:$0xff] }
 0x148   : > { %976 = vmatprep.subr.mxu1 %v814_v54  ;;  %900 = vmatpush1.msra.mxu0 %v811_v55  ;;  %v1090_v54 = vld [vmem:[#allocation4 + $0x280] sm:$0xff]  ;;  %v1088_v55 = vld [vmem:[#allocation4 + $0x270] sm:$0xff] }
 0x149   : > { %977 = vmatpush1.msra.mxu1 %v813_v56  ;;  %901 = vmatprep.subr.mxu0 %v808_v57  ;;  %v1086_v56 = vld [vmem:[#allocation4 + $0x260] sm:$0xff]  ;;  %v1085_v57 = vld [vmem:[#allocation4 + $0x258] sm:$0xff] }
 0x14a   : > { %978 = vmatprep.subr.mxu1 %v810_v58  ;;  %902 = vmatpush1.msra.mxu0 %v807_v59  ;;  %v1087_v58 = vld [vmem:[#allocation4 + $0x268] sm:$0xff] }
 0x14b   : > { %979 = vmatpush1.msra.mxu1 %v809_v60  ;;  %1106 = vmatprep.subr.mxu0 %v1104_v61  ;;  %v1083_v59 = vld [vmem:[#allocation4 + $0x248] sm:$0xff]  ;;  %v1082_v60 = vld [vmem:[#allocation4 + $0x240] sm:$0xff]  ;;  %v1084_v61 = vld [vmem:[#allocation4 + $0x250] sm:$0xff] }
 0x14c   : > { %1612 = vmatprep.subr.mxu1 %v1105_v62 }
 0x1e9   : > { %v687_v1 = vpop.f32.mrf.mxu0 }
 0x1ea   : > { %v1611_v2 = vpop.f32.mrf.mxu1  ;;  %v773_v8 = vrot.slane %v687_v1, 7  ;;  %v1081_v1 = vld [vmem:[#allocation4 + $0x238] sm:$0xff] }
 0x1eb   : > { %v689_v3 = vpop.f32.mrf.mxu0  ;;  %v780_v5 = vrot.slane %v1611_v2, 1  ;;  %v1077_v2 = vld [vmem:[#allocation4 + $0x218] sm:$0xff] }
 0x1ec   : > { %v764_v4 = vpop.f32.mrf.mxu1 }
 0x1ed   : > { %v779_v6 = vrot.slane %v764_v4, 1  ;;  %v693_v7 = vpop.f32.mrf.mxu0  ;;  %v1078_v4 = vld [vmem:[#allocation4 + $0x220] sm:$0xff] }
 0x1ee   : > { %v774_v9 = vrot.slane %v693_v7, 7  ;;  %v1075_v7 = vld [vmem:[#allocation4 + $0x208] sm:$0xff] }
 0x1ef   : > { %v695_v10 = vpop.f32.mrf.mxu0  ;;  %v782_v11 = vsel %vm534_vm3, %v780_v5, %v779_v6  ;;  %v781_v20 = vsel %vm534_vm3, %v779_v6, %v780_v5  ;;  %v1074_v5 = vld [vmem:[#allocation4 + $0x200] sm:$0xff]  ;;  %v1073_v6 = vld [vmem:[#allocation4 + $0x1f8] sm:$0xff] }
 0x1f0   : > { %v776_v12 = vsel %vm527_vm1, %v774_v9, %v773_v8  ;;  %v775_v13 = vsel %vm527_vm1, %v773_v8, %v774_v9  ;;  %v784_v18 = vsel %vm1982_vm4, %v782_v11, 0.0  ;;  %v1071_v8 = vld [vmem:[#allocation4 + $0x1e8] sm:$0xff]  ;;  %v1070_v9 = vld [vmem:[#allocation4 + $0x1e0] sm:$0xff]  ;;  %v1068_v11 = vld [vmem:[#allocation4 + $0x1d0] sm:$0xff] }
 0x1f1   : > { %v777_v15 = vsel %vm1969_vm2, %v776_v12, 0.0  ;;  %v786_v16 = vadd.f32 %v775_v13, %v695_v10  ;;  %v1072_v10 = vld [vmem:[#allocation4 + $0x1f0] sm:$0xff]  ;;  %v1067_v12 = vld [vmem:[#allocation4 + $0x1c8] sm:$0xff]  ;;  %v1069_v13 = vld [vmem:[#allocation4 + $0x1d8] sm:$0xff] }
 0x1f2   : > { %v785_v17 = vadd.f32 %v777_v15, %v689_v3  ;;  %v1076_v3 = vld [vmem:[#allocation4 + $0x210] sm:$0xff] }
 0x1f3   : > { %v788_v21 = vadd.f32 %v786_v16, %v784_v18  ;;  %v1064_v15 = vld [vmem:[#allocation4 + $0x1b0] sm:$0xff]  ;;  %v1066_v16 = vld [vmem:[#allocation4 + $0x1c0] sm:$0xff]  ;;  %v1061_v18 = vld [vmem:[#allocation4 + $0x198] sm:$0xff] }
 0x1f4   : > { %v787_v23 = vadd.f32 %v785_v17, %v781_v20  ;;  %v1062_v17 = vld [vmem:[#allocation4 + $0x1a0] sm:$0xff]  ;;  %v1059_v20 = vld [vmem:[#allocation4 + $0x188] sm:$0xff] }
 0x1f5   : > { %v795_v26 = vmul.f32 %v1513_v19, %v788_v21  ;;  %v1058_v21 = vld [vmem:[#allocation4 + $0x180] sm:$0xff] }
 0x1f6   : > { %v794_v29 = vmul.f32 %v1513_v19, %v787_v23  ;;  %v1063_v19 = vld [vmem:[#allocation4 + $0x1a8] sm:$0xff]  ;;  %v1307_v23 = vld [vmem:[#allocation6 + $0x78] sm:$0xff] }
 0x1f7   : > { %v802_v33 = vadd.f32 %v1514_v27, %v795_v26 }
 0x1f8   : > { %v801_v31 = vadd.f32 %v1514_v27, %v794_v29 }
 0x1f9   : > { %v804_v36 = vadd.f32 %v802_v33, %v572_v34 }
 0x1fa   : > { %v803_v35 = vadd.f32 %v801_v31, %v571_v30 }
 0x1fb   : > { %v2218_v42 = vmax.f32 %v804_v36, 0.0 }
 0x1fc   : > { %v2212_v37 = vmax.f32 %v803_v35, 0.0 }
 0x1fe   : > { %936 = vmatmul.mubr.f32.vlgmr.msra.gmra.mxu0 %v2212_v37  ;;  %1013 = vmatmul.mubr.f32.vlgmr.msra.gmra.mxu1 %v2212_v37 }
 0x1ff   : > { %941 = vmatprep.mubr.f32.mxu0 %v1831_v0  ;;  %1018 = vmatprep.mubr.f32.mxu1 %v1831_v0 }
 0x200   : > { %1107 = vmatpush1.msra.mxu0 %v1103_v38  ;;  %1613 = vmatpush3.msra.mxu1 %v1105_v62  ;;  %v1080_v62 = vld [vmem:[#allocation4 + $0x230] sm:$0xff] }
 0x201   : > { %1108 = vmatprep.subr.mxu0 %v1101_v39  ;;  %1614 = vmatprep.subr.mxu1 %v1102_v40 }
 0x202   : > { %942 = vmatmul.mubr.f32.gmra.mxu0 %v2218_v42  ;;  %1019 = vmatmul.mubr.f32.gmra.mxu1 %v2218_v42 }
 0x203   : > { %1109 = vmatpush1.msra.mxu0 %v1100_v43  ;;  %1615 = vmatpush3.msra.mxu1 %v1102_v40 }
 0x204   : > { %1110 = vmatprep.subr.mxu0 %v1098_v44  ;;  %1616 = vmatprep.subr.mxu1 %v1099_v45 }
 0x205   : > { %1111 = vmatpush1.msra.mxu0 %v1097_v46  ;;  %1617 = vmatpush3.msra.mxu1 %v1099_v45 }
 0x206   : > { %1112 = vmatprep.subr.mxu0 %v1095_v47  ;;  %1618 = vmatprep.subr.mxu1 %v1096_v48  ;;  %v1515_v47 = vld [vmem:[%s2284_s5 + $0x6] ss:$0 sm:$0xff] }
 0x207   : > { %1113 = vmatpush1.msra.mxu0 %v1094_v49  ;;  %1619 = vmatpush3.msra.mxu1 %v1096_v48 }
 0x208   : > { %1114 = vmatprep.subr.mxu0 %v1092_v50  ;;  %1620 = vmatprep.subr.mxu1 %v1093_v51 }
 0x209   : > { %1115 = vmatpush1.msra.mxu0 %v1091_v52  ;;  %1621 = vmatpush3.msra.mxu1 %v1093_v51  ;;  %v1516_v51 = vld [vmem:[%s2284_s5 + $0x7] ss:$0 sm:$0xff] }
 0x20a   : > { %1116 = vmatprep.subr.mxu0 %v1089_v53  ;;  %1622 = vmatprep.subr.mxu1 %v1090_v54 }
 0x20b   : > { %1117 = vmatpush1.msra.mxu0 %v1088_v55  ;;  %1623 = vmatpush3.msra.mxu1 %v1090_v54 }
 0x20c   : > { %1118 = vmatprep.subr.mxu0 %v1086_v56  ;;  %1170 = vmatprep.mubr.f32.mxu0 %v1831_v0 }
 0x20d   : > { %1119 = vmatpush1.msra.mxu0 %v1085_v57  ;;  %1624 = vmatprep.subr.mxu1 %v1087_v58 }
 0x20e   : > { %1120 = vmatprep.subr.mxu0 %v1083_v59  ;;  %1625 = vmatpush3.msra.mxu1 %v1087_v58  ;;  %v1306_v58 = vld [vmem:[#allocation6 + $0x70] sm:$0xff]  ;;  %v1305_v59 = vld [vmem:[#allocation6 + $0x68] sm:$0xff] }
 0x20f   : > { %1121 = vmatpush1.msra.mxu0 %v1082_v60  ;;  %1626 = vmatprep.subr.mxu1 %v1084_v61  ;;  %v1304_v60 = vld [vmem:[#allocation6 + $0x60] sm:$0xff] }
 0x210   : > { %1122 = vmatprep.subr.mxu0 %v1080_v62  ;;  %1627 = vmatpush3.msra.mxu1 %v1084_v61  ;;  %v1303_v61 = vld [vmem:[#allocation6 + $0x58] sm:$0xff]  ;;  %v1302_v62 = vld [vmem:[#allocation6 + $0x50] sm:$0xff] }
 0x211   : > { %1123 = vmatpush1.msra.mxu0 %v1079_v63  ;;  %1628 = vmatprep.subr.mxu1 %v1081_v1  ;;  %v1301_v63 = vld [vmem:[#allocation6 + $0x48] sm:$0xff] }
 0x212   : > { %1124 = vmatprep.subr.mxu0 %v1077_v2  ;;  %1629 = vmatpush3.msra.mxu1 %v1081_v1  ;;  %v1299_v1 = vld [vmem:[#allocation6 + $0x38] sm:$0xff]  ;;  %v1298_v2 = vld [vmem:[#allocation6 + $0x30] sm:$0xff] }
 0x213   : > { %1125 = vmatpush1.msra.mxu0 %v1076_v3  ;;  %1630 = vmatprep.subr.mxu1 %v1078_v4  ;;  %v1297_v3 = vld [vmem:[#allocation6 + $0x28] sm:$0xff] }
 0x214   : > { %1126 = vmatprep.subr.mxu0 %v1074_v5  ;;  %1631 = vmatpush3.msra.mxu1 %v1078_v4  ;;  %v1296_v4 = vld [vmem:[#allocation6 + $0x20] sm:$0xff]  ;;  %v1295_v5 = vld [vmem:[#allocation6 + $0x18] sm:$0xff] }
 0x215   : > { %1127 = vmatpush1.msra.mxu0 %v1073_v6  ;;  %1632 = vmatprep.subr.mxu1 %v1075_v7  ;;  %v1294_v6 = vld [vmem:[#allocation6 + $0x10] sm:$0xff] }
 0x216   : > { %1128 = vmatprep.subr.mxu0 %v1071_v8  ;;  %1633 = vmatpush3.msra.mxu1 %v1075_v7  ;;  %v1293_v7 = vld [vmem:[#allocation6 + $0x8] sm:$0xff]  ;;  %v1292_v8 = vld [vmem:[#allocation6] sm:$0xff] }
 0x217   : > { %1129 = vmatpush1.msra.mxu0 %v1070_v9  ;;  %1634 = vmatprep.subr.mxu1 %v1072_v10 }
 0x218   : > { %1130 = vmatprep.subr.mxu0 %v1068_v11  ;;  %1635 = vmatpush3.msra.mxu1 %v1072_v10 }
 0x219   : > { %1131 = vmatpush1.msra.mxu0 %v1067_v12  ;;  %1636 = vmatprep.subr.mxu1 %v1069_v13 }
 0x21a   : > { %1132 = vmatprep.subr.mxu0 %v1065_v14  ;;  %1637 = vmatpush3.msra.mxu1 %v1069_v13 }
 0x21b   : > { %1133 = vmatpush1.msra.mxu0 %v1064_v15  ;;  %1638 = vmatprep.subr.mxu1 %v1066_v16 }
 0x21c   : > { %1134 = vmatprep.subr.mxu0 %v1062_v17  ;;  %1639 = vmatpush3.msra.mxu1 %v1066_v16 }
 0x21d   : > { %1135 = vmatpush1.msra.mxu0 %v1061_v18  ;;  %1640 = vmatprep.subr.mxu1 %v1063_v19 }
 0x21e   : > { %1136 = vmatprep.subr.mxu0 %v1059_v20  ;;  %1641 = vmatpush3.msra.mxu1 %v1063_v19 }
 0x21f   : > { %1137 = vmatpush1.msra.mxu0 %v1058_v21  ;;  %1642 = vmatprep.subr.mxu1 %v1060_v22 }
 0x220   : > { %1643 = vmatpush3.msra.mxu1 %v1060_v22  ;;  %1647 = vmatprep.subr.mxu0 %v1307_v23 }
 0x2be   : > { %v937_v24 = vpop.f32.mrf.mxu0  ;;  %v1014_v26 = vpop.f32.mrf.mxu1 }
 0x2bf   : > { %v1025_v31 = vrot.slane %v937_v24, 7  ;;  %v1031_v33 = vrot.slane %v1014_v26, 1 }
 0x2c0   : > { %v939_v27 = vpop.f32.mrf.mxu0  ;;  %v2223_v28 = vpop.f32.mrf.mxu1 }
 0x2c2   : > { %v943_v29 = vpop.f32.mrf.mxu0  ;;  %v1020_v30 = vpop.f32.mrf.mxu1 }
 0x2c3   : > { %v1026_v34 = vrot.slane %v943_v29, 7  ;;  %v1032_v35 = vrot.slane %v1020_v30, 1  ;;  %v1517_v29 = vld [vmem:[%s2284_s5 + $0x8] ss:$0 sm:$0xff] }
 0x2c4   : > { %v945_v36 = vpop.f32.mrf.mxu0  ;;  %v1022_v9 = vpop.f32.mrf.mxu1 }
 0x2c5   : > { %v1028_v38 = vsel %vm527_vm1, %v1026_v34, %v1025_v31  ;;  %v1027_v39 = vsel %vm527_vm1, %v1025_v31, %v1026_v34  ;;  %v1034_v40 = vsel %vm534_vm3, %v1032_v35, %v1031_v33  ;;  %v1033_v48 = vsel %vm534_vm3, %v1031_v33, %v1032_v35  ;;  %v1518_v34 = vld [vmem:[%s2284_s5 + $0x9] ss:$0 sm:$0xff] }
 0x2c6   : > { %v1029_v43 = vsel %vm1969_vm2, %v1028_v38, 0.0  ;;  %v1036_v44 = vsel %vm1982_vm4, %v1034_v40, 0.0  ;;  %v1038_v45 = vadd.f32 %v1027_v39, %v945_v36 }
 0x2c7   : > { %v1037_v46 = vadd.f32 %v1029_v43, %v939_v27 }
 0x2c8   : > { %v1040_v49 = vadd.f32 %v1038_v45, %v1036_v44  ;;  %v1519_v44 = vld [vmem:[%s2284_s5 + $0xa] ss:$0 sm:$0xff] }
 0x2c9   : > { %v1039_v50 = vadd.f32 %v1037_v46, %v1033_v48  ;;  %v1520_v48 = vld [vmem:[%s2284_s5 + $0xb] ss:$0 sm:$0xff] }
 0x2ca   : > { %v1047_v52 = vmul.f32 %v1515_v47, %v1040_v49 }
 0x2cb   : > { %v1046_v53 = vmul.f32 %v1515_v47, %v1039_v50 }
 0x2cc   : > { %v1054_v54 = vadd.f32 %v1516_v51, %v1047_v52 }
 0x2cd   : > { %v1053_v55 = vadd.f32 %v1516_v51, %v1046_v53 }
 0x2ce   : > { %v1056_v57 = vmax.f32 %v1054_v54, 0.0 }
 0x2cf   : > { %v1055_v56 = vmax.f32 %v1053_v55, 0.0 }
 0x2d1   : > { %1171 = vmatmul.mubr.f32.vlgmr.msra.gmra.mxu0 %v1055_v56  ;;  %1644 = vmatprep.mubr.f32.mxu1 %v1055_v56 }
 0x2d2   : > { %1645 = vmatmul.mubr.f32.vlgmr.msra.gmra.mxu1 %v1056_v57  ;;  %1176 = vmatprep.mubr.f32.mxu0 %v1831_v0  ;;  %v1300_v0 = vld [vmem:[#allocation6 + $0x40] sm:$0xff] }
 0x2d3   : > { %1648 = vmatpush3.msra.mxu0 %v1307_v23 }
 0x2d4   : > { %1649 = vmatprep.subr.mxu0 %v1306_v58 }
 0x2d5   : > { %1177 = vmatmul.mubr.f32.gmra.mxu0 %v1056_v57 }
 0x2d6   : > { %1650 = vmatpush3.msra.mxu0 %v1306_v58 }
 0x2d7   : > { %1651 = vmatprep.subr.mxu0 %v1305_v59 }
 0x2d8   : > { %1652 = vmatpush3.msra.mxu0 %v1305_v59 }
 0x2d9   : > { %1653 = vmatprep.subr.mxu0 %v1304_v60 }
 0x2da   : > { %1654 = vmatpush3.msra.mxu0 %v1304_v60 }
 0x2db   : > { %1655 = vmatprep.subr.mxu0 %v1303_v61 }
 0x2dc   : > { %1656 = vmatpush3.msra.mxu0 %v1303_v61 }
 0x2dd   : > { %1657 = vmatprep.subr.mxu0 %v1302_v62 }
 0x2de   : > { %1658 = vmatpush3.msra.mxu0 %v1302_v62 }
 0x2df   : > { %1659 = vmatprep.subr.mxu0 %v1301_v63 }
 0x2e0   : > { %1660 = vmatpush3.msra.mxu0 %v1301_v63 }
 0x2e1   : > { %1661 = vmatprep.subr.mxu0 %v1300_v0 }
 0x2e2   : > { %1662 = vmatpush3.msra.mxu0 %v1300_v0 }
 0x2e3   : > { %1663 = vmatprep.subr.mxu0 %v1299_v1 }
 0x2e4   : > { %1664 = vmatpush3.msra.mxu0 %v1299_v1 }
 0x2e5   : > { %1665 = vmatprep.subr.mxu0 %v1298_v2 }
 0x2e6   : > { %1666 = vmatpush3.msra.mxu0 %v1298_v2 }
 0x2e7   : > { %1667 = vmatprep.subr.mxu0 %v1297_v3 }
 0x2e8   : > { %1668 = vmatpush3.msra.mxu0 %v1297_v3 }
 0x2e9   : > { %1669 = vmatprep.subr.mxu0 %v1296_v4 }
 0x2ea   : > { %1670 = vmatpush3.msra.mxu0 %v1296_v4 }
 0x2eb   : > { %1671 = vmatprep.subr.mxu0 %v1295_v5 }
 0x2ec   : > { %1672 = vmatpush3.msra.mxu0 %v1295_v5 }
 0x2ed   : > { %1673 = vmatprep.subr.mxu0 %v1294_v6 }
 0x2ee   : > { %1674 = vmatpush3.msra.mxu0 %v1294_v6 }
 0x2ef   : > { %1675 = vmatprep.subr.mxu0 %v1293_v7 }
 0x2f0   : > { %1676 = vmatpush3.msra.mxu0 %v1293_v7 }
 0x2f1   : > { %1677 = vmatprep.subr.mxu0 %v1292_v8 }
 0x2f2   : > { %1678 = vmatpush3.msra.mxu0 %v1292_v8 }
 0x391   : > { %v1172_v10 = vpop.f32.mrf.mxu0 }
 0x392   : > { %v1646_v11 = vpop.f32.mrf.mxu1  ;;  %v1258_v17 = vrot.slane %v1172_v10, 7 }
 0x393   : > { %v1174_v12 = vpop.f32.mrf.mxu0  ;;  %v1265_v14 = vrot.slane %v1646_v11, 1 }
 0x394   : > { %v1249_v13 = vpop.f32.mrf.mxu1 }
 0x395   : > { %v1264_v15 = vrot.slane %v1249_v13, 1  ;;  %v1178_v16 = vpop.f32.mrf.mxu0 }
 0x396   : > { %v1259_v18 = vrot.slane %v1178_v16, 7 }
 0x397   : > { %v1267_v19 = vsel %vm534_vm3, %v1265_v14, %v1264_v15  ;;  %v1180_v20 = vpop.f32.mrf.mxu0  ;;  %v1266_v30 = vsel %vm534_vm3, %v1264_v15, %v1265_v14 }
 0x398   : > { %v1261_v21 = vsel %vm527_vm1, %v1259_v18, %v1258_v17  ;;  %v1260_v22 = vsel %vm527_vm1, %v1258_v17, %v1259_v18  ;;  %v1269_v27 = vsel %vm1982_vm4, %v1267_v19, 0.0 }
 0x399   : > { %v1262_v23 = vsel %vm1969_vm2, %v1261_v21, 0.0  ;;  %v1271_v24 = vadd.f32 %v1260_v22, %v1180_v20 }
 0x39a   : > { %v1270_v26 = vadd.f32 %v1262_v23, %v1174_v12 }
 0x39b   : > { %v1273_v31 = vadd.f32 %v1271_v24, %v1269_v27 }
 0x39c   : > { %v1272_v33 = vadd.f32 %v1270_v26, %v1266_v30 }
 0x39d   : > { %v1280_v32 = vmul.f32 %v1517_v29, %v1273_v31 }
 0x39e   : > { %v1279_v35 = vmul.f32 %v1517_v29, %v1272_v33 }
 0x39f   : > { %v1287_v36 = vadd.f32 %v1518_v34, %v1280_v32 }
 0x3a0   : > { %v1286_v38 = vadd.f32 %v1518_v34, %v1279_v35 }
 0x3a1   : > { %v1289_v41 = vadd.f32 %v1287_v36, %v2218_v42 }
 0x3a2   : > { %v1288_v39 = vadd.f32 %v1286_v38, %v2212_v37 }
 0x3a3   : > { %v1291_v43 = vmax.f32 %v1289_v41, 0.0 }
 0x3a4   : > { %v1290_v40 = vmax.f32 %v1288_v39, 0.0 }
 0x3a6   : > { %1679 = vmatprep.mubr.f32.mxu0 %v1290_v40 }
 0x3a7   : > { %1680 = vmatmul.mubr.f32.vlgmr.msra.gmra.mxu0 %v1291_v43 }
 0x467   : > { %v1681_v25 = vpop.f32.mrf.mxu0 }
 0x468   : > { %v1384_v45 = vadd.f32 %v1681_v25, %v1022_v9 }
 0x469   : > { %v1374_v46 = vpop.f32.mrf.mxu0 }
 0x46a   : > { %v1391_v47 = vmul.f32 %v1519_v44, %v1384_v45  ;;  %v1383_v42 = vadd.f32 %v1374_v46, %v2223_v28 }
 0x46c   : > { %v1390_v49 = vmul.f32 %v1519_v44, %v1383_v42  ;;  %v1398_v37 = vadd.f32 %v1520_v48, %v1391_v47 }
 0x46e   : > { %v1397_v50 = vadd.f32 %v1520_v48, %v1390_v49  ;;  %v1400_v52 = vmax.f32 %v1398_v37, 0.0 }
 0x470   : > { %v1399_v51 = vmax.f32 %v1397_v50, 0.0  ;;  %1402 = vst [vmem:[%s297_s12 + $0x8] sm:$0xff] %v1400_v52 }
 0x472   : > { %1401 = vst [vmem:[%s297_s12] sm:$0xff] %v1399_v51 }
 0x473 PF: > { %s18_s21 = sadd.s32 1, %s1820_s21  }
 0x474   : > { %p15_p2 = scmp.ge.s32.totalorder %s18_s21, 4  }
 0x476   :  { %17 = sbr.rel (!%p15_p2) target bundleno = 2 (0x2), region = 88 }
 0x47b   :  { %1425 = vsyncpa [#allocation3], 1 }
 0x47c   :  { %1427 = vsyncpa [#allocation3 + $0x1], 1 }
 0x47d   :  { %1428 = vsyncpa [#allocation5], 1 }

</bundles_post_ra>
